<compile_context>
chip_gen: v5e
topology: v5e:2x2
jax: 0.10.0
libtpu: 0.0.40
codegen_flags: <defaults>
</compile_context>

<pallas_src>
import jax
import jax.numpy as jnp
from jax.experimental import pallas as pl
from jax.experimental.pallas import tpu as pltpu

LEAKY_ALPHA = 1.0 / 5.5

D_IN = 206
D_IN_PAD = 256     # lane-aligned K for the first matmul (zero-padded columns)
H1 = 1024
H2 = 256
D_OUT = 2
D_OUT_PAD = 128    # lane-dense output block (slice [:, :2] in the wrapper)

TILE_B_MAX = 1024  # large batch tile amortizes the ~0.35us per-grid-step overhead


def _round_up(x, m):
    return (x + m - 1) // m * m


def _cdiv(a, b):
    return -(-a // b)


def _leaky_relu(v):
    # alpha > 0  =>  leaky_relu(v) == max(v, alpha * v)  (mul + max, no select)
    return jnp.maximum(v, LEAKY_ALPHA * v)


def mlp_kernel(x_ref, w1_ref, b1_ref, w2_ref, b2_ref, w3_ref, b3_ref, o_ref):
    # TODO(synk): torch.nn.Dropout(0.4) is identity at inference time; training-mode
    # dropout (random masking) is not implemented here.
    x = x_ref[...]  # bf16 (tile_b, 256)

    # fc1: (tile_b, 256) @ (256, 1024) -> f32 acc -> bf16 epilogue
    h1 = jnp.dot(x, w1_ref[...], preferred_element_type=jnp.float32)
    h1 = _leaky_relu(h1.astype(jnp.bfloat16) + b1_ref[...])        # bf16

    # fc: (tile_b, 1024) @ (1024, 256)
    h2 = jnp.dot(h1, w2_ref[...], preferred_element_type=jnp.float32)
    h2 = _leaky_relu(h2.astype(jnp.bfloat16) + b2_ref[...])        # bf16

    # fc2: (tile_b, 256) @ (256, 128-padded-from-2), f32 bias add
    out = jnp.dot(h2, w3_ref[...], preferred_element_type=jnp.float32) + b3_ref[...]
    # torch.squeeze(x, 1): size along dim 1 is 2 -> no-op; keep (B, out) layout.
    o_ref[...] = out.astype(o_ref.dtype)                           # bf16 writeback


def prepare_params(params):
    """One-time layout/dtype prep (hoisted out of the per-call hot path).

    `params` holds f32 weights in (in_features, out_features) layout and f32
    (1, out_features) biases.  Returns kernel-ready padded bf16 weights and
    bf16/f32 biases.
    """
    w1 = jnp.zeros((D_IN_PAD, H1), jnp.bfloat16)
    w1 = w1.at[:D_IN, :].set(params["w1"].astype(jnp.bfloat16))
    b1 = params["b1"].astype(jnp.bfloat16).reshape(1, H1)

    w2 = params["w2"].astype(jnp.bfloat16)
    b2 = params["b2"].astype(jnp.bfloat16).reshape(1, H2)

    w3 = jnp.zeros((H2, D_OUT_PAD), jnp.bfloat16)
    w3 = w3.at[:, :D_OUT].set(params["w3"].astype(jnp.bfloat16))
    b3 = jnp.zeros((1, D_OUT_PAD), jnp.float32).at[:, :D_OUT].set(
        params["b3"].reshape(1, D_OUT))

    return {"w1": w1, "b1": b1, "w2": w2, "b2": b2, "w3": w3, "b3": b3}


def linear_classifier_forward(x, prepared):
    """x: (B, 206) float32. `prepared` is the output of prepare_params()."""
    B = x.shape[0]
    if B == 0:
        return jnp.zeros((0, D_OUT), jnp.float32)

    # ---- batch tiling ----
    if B >= 256:
        # >= 2 tiles so both v7x TensorCores get work; tile_b multiple of 8.
        tile_b = min(TILE_B_MAX, _round_up(_cdiv(B, 2), 8))
    else:
        tile_b = _round_up(B, 8)
    b_pad = _round_up(B, tile_b)
    grid = (b_pad // tile_b,)

    # ---- x path: one bf16 cast + one bf16 pad (no padded f32 copy) ----
    x_bf = x.astype(jnp.bfloat16)
    x_p = jnp.zeros((b_pad, D_IN_PAD), jnp.bfloat16).at[:B, :D_IN].set(x_bf)

    def resident(shape):
        # weights / biases: same block every grid step -> stay VMEM-resident
        return pl.BlockSpec(shape, lambda i, _s=len(shape): (0,) * _s)

    out_padded = pl.pallas_call(
        mlp_kernel,
        out_shape=jax.ShapeDtypeStruct((b_pad, D_OUT_PAD), jnp.bfloat16),
        grid=grid,
        in_specs=[
            pl.BlockSpec((tile_b, D_IN_PAD), lambda i: (i, 0)),   # x: batch-tiled
            resident((D_IN_PAD, H1)), resident((1, H1)),
            resident((H1, H2)), resident((1, H2)),
            resident((H2, D_OUT_PAD)), resident((1, D_OUT_PAD)),
        ],
        out_specs=pl.BlockSpec((tile_b, D_OUT_PAD), lambda i: (i, 0)),
        compiler_params=pltpu.CompilerParams(
            dimension_semantics=("parallel",),     # megacore sharding on v7x
            vmem_limit_bytes=32 << 20,             # safe on v7x's 64 MiB physical
        ),
    )(x_p, prepared["w1"], prepared["b1"], prepared["w2"], prepared["b2"],
      prepared["w3"], prepared["b3"])

    return out_padded[:B, :D_OUT].astype(jnp.float32)


def init_params(key, input_dim=D_IN):
    """Deterministic init mimicking torch.nn.Linear default (uniform +-1/sqrt(fan_in)).

    Weights stored transposed relative to PyTorch: (in_features, out_features), f32.
    Biases stored as (1, out_features), f32.
    """
    dims = [(input_dim, H1), (H1, H2), (H2, D_OUT)]
    params = {}
    for idx, (fan_in, fan_out) in enumerate(dims, start=1):
        key, kw, kb = jax.random.split(key, 3)
        bound = 1.0 / jnp.sqrt(jnp.float32(fan_in))
        params[f"w{idx}"] = jax.random.uniform(
            kw, (fan_in, fan_out), jnp.float32, minval=-bound, maxval=bound)
        params[f"b{idx}"] = jax.random.uniform(
            kb, (1, fan_out), jnp.float32, minval=-bound, maxval=bound)
    return params


def reference_forward(x, params):
    h = jnp.where(x @ params["w1"] + params["b1"] >= 0,
                  x @ params["w1"] + params["b1"],
                  LEAKY_ALPHA * (x @ params["w1"] + params["b1"]))
    h = jnp.where(h @ params["w2"] + params["b2"] >= 0,
                  h @ params["w2"] + params["b2"],
                  LEAKY_ALPHA * (h @ params["w2"] + params["b2"]))
    return h @ params["w3"] + params["b3"]


if __name__ == "__main__":
    key = jax.random.PRNGKey(0)
    key, kx = jax.random.split(key)

    B, INPUT_DIM = 2, D_IN
    x = jax.random.normal(kx, (B, INPUT_DIM), dtype=jnp.float32)
    params = init_params(key, input_dim=INPUT_DIM)

    prepared = prepare_params(params)          # one-time param layout/dtype prep
    out = linear_classifier_forward(x, prepared)
    out = jax.block_until_ready(out)

    ref = reference_forward(x, params)
    assert out.shape == (B, D_OUT), out.shape
    # Matmul operands / epilogue / output pass through bf16 (f32 MXU accumulation);
    # reference is full f32, so tolerance is loosened accordingly.
    assert jnp.allclose(out, ref, atol=5e-2, rtol=5e-2), (out, ref)

    print("KERNEL_OK")
</pallas_src>

<mosaic_0001>
module attributes {stable_mosaic.version = 11 : i64} {
  func.func @mlp_kernel(%arg0: i32, %arg1: memref<8x256xbf16, #tpu.memory_space<vmem>>, %arg2: memref<256x1024xbf16, #tpu.memory_space<vmem>>, %arg3: memref<1x1024xbf16, #tpu.memory_space<vmem>>, %arg4: memref<1024x256xbf16, #tpu.memory_space<vmem>>, %arg5: memref<1x256xbf16, #tpu.memory_space<vmem>>, %arg6: memref<256x128xbf16, #tpu.memory_space<vmem>>, %arg7: memref<1x128xf32, #tpu.memory_space<vmem>>, %arg8: memref<8x128xbf16, #tpu.memory_space<vmem>>) attributes {dimension_semantics = [#tpu.dimension_semantics<parallel>], iteration_bounds = array<i64: 1>, scalar_prefetch = 0 : i64, scratch_operands = 0 : i64, tpu.core_type = #tpu.core_type<tc>, window_params = [{transform_indices = @transform_0, window_bounds = array<i64: 8, 256>}, {pipeline_mode = #tpu.pipeline_mode<synchronous>, transform_indices = @transform_1, window_bounds = array<i64: 256, 1024>}, {pipeline_mode = #tpu.pipeline_mode<synchronous>, transform_indices = @transform_2, window_bounds = array<i64: 1, 1024>}, {pipeline_mode = #tpu.pipeline_mode<synchronous>, transform_indices = @transform_3, window_bounds = array<i64: 1024, 256>}, {pipeline_mode = #tpu.pipeline_mode<synchronous>, transform_indices = @transform_4, window_bounds = array<i64: 1, 256>}, {pipeline_mode = #tpu.pipeline_mode<synchronous>, transform_indices = @transform_5, window_bounds = array<i64: 256, 128>}, {pipeline_mode = #tpu.pipeline_mode<synchronous>, transform_indices = @transform_6, window_bounds = array<i64: 1, 128>}, {transform_indices = @transform_7, window_bounds = array<i64: 8, 128>}]} {
    %c0 = arith.constant 0 : index
    %c0_0 = arith.constant 0 : index
    %0 = vector.load %arg1[%c0, %c0_0] : memref<8x256xbf16, #tpu.memory_space<vmem>>, vector<8x256xbf16>
    %c0_1 = arith.constant 0 : index
    %c0_2 = arith.constant 0 : index
    %1 = vector.load %arg2[%c0_1, %c0_2] : memref<256x1024xbf16, #tpu.memory_space<vmem>>, vector<256x1024xbf16>
    %cst = arith.constant dense<0.000000e+00> : vector<8x1024xf32>
    %2 = tpu.matmul %0, %1, %cst {dimension_numbers = #tpu.dot_dimension_numbers<[1], [0], [0], [1], [0, 0, 1, 1], [], []>} : vector<8x256xbf16>, vector<256x1024xbf16>, vector<8x1024xf32> -> vector<8x1024xf32>
    %3 = arith.truncf %2 : vector<8x1024xf32> to vector<8x1024xbf16>
    %c0_3 = arith.constant 0 : index
    %c0_4 = arith.constant 0 : index
    %4 = vector.load %arg3[%c0_3, %c0_4] : memref<1x1024xbf16, #tpu.memory_space<vmem>>, vector<1x1024xbf16>
    %5 = vector.broadcast %4 : vector<1x1024xbf16> to vector<8x1024xbf16>
    %6 = arith.addf %3, %5 : vector<8x1024xbf16>
    %cst_5 = arith.constant 1.816410e-01 : bf16
    %7 = vector.broadcast %cst_5 : bf16 to vector<8x1024xbf16>
    %8 = arith.mulf %7, %6 : vector<8x1024xbf16>
    %9 = arith.maximumf %6, %8 : vector<8x1024xbf16>
    %c0_6 = arith.constant 0 : index
    %c0_7 = arith.constant 0 : index
    %10 = vector.load %arg4[%c0_6, %c0_7] : memref<1024x256xbf16, #tpu.memory_space<vmem>>, vector<1024x256xbf16>
    %cst_8 = arith.constant dense<0.000000e+00> : vector<8x256xf32>
    %11 = tpu.matmul %9, %10, %cst_8 {dimension_numbers = #tpu.dot_dimension_numbers<[1], [0], [0], [1], [0, 0, 1, 1], [], []>} : vector<8x1024xbf16>, vector<1024x256xbf16>, vector<8x256xf32> -> vector<8x256xf32>
    %12 = arith.truncf %11 : vector<8x256xf32> to vector<8x256xbf16>
    %c0_9 = arith.constant 0 : index
    %c0_10 = arith.constant 0 : index
    %13 = vector.load %arg5[%c0_9, %c0_10] : memref<1x256xbf16, #tpu.memory_space<vmem>>, vector<1x256xbf16>
    %14 = vector.broadcast %13 : vector<1x256xbf16> to vector<8x256xbf16>
    %15 = arith.addf %12, %14 : vector<8x256xbf16>
    %cst_11 = arith.constant 1.816410e-01 : bf16
    %16 = vector.broadcast %cst_11 : bf16 to vector<8x256xbf16>
    %17 = arith.mulf %16, %15 : vector<8x256xbf16>
    %18 = arith.maximumf %15, %17 : vector<8x256xbf16>
    %c0_12 = arith.constant 0 : index
    %c0_13 = arith.constant 0 : index
    %19 = vector.load %arg6[%c0_12, %c0_13] : memref<256x128xbf16, #tpu.memory_space<vmem>>, vector<256x128xbf16>
    %cst_14 = arith.constant dense<0.000000e+00> : vector<8x128xf32>
    %20 = tpu.matmul %18, %19, %cst_14 {dimension_numbers = #tpu.dot_dimension_numbers<[1], [0], [0], [1], [0, 0, 1, 1], [], []>} : vector<8x256xbf16>, vector<256x128xbf16>, vector<8x128xf32> -> vector<8x128xf32>
    %c0_15 = arith.constant 0 : index
    %c0_16 = arith.constant 0 : index
    %21 = vector.load %arg7[%c0_15, %c0_16] : memref<1x128xf32, #tpu.memory_space<vmem>>, vector<1x128xf32>
    %22 = vector.broadcast %21 : vector<1x128xf32> to vector<8x128xf32>
    %23 = arith.addf %20, %22 : vector<8x128xf32>
    %24 = arith.truncf %23 : vector<8x128xf32> to vector<8x128xbf16>
    %c0_17 = arith.constant 0 : index
    %c0_18 = arith.constant 0 : index
    %25 = vector.load %arg8[%c0_17, %c0_18] : memref<8x128xbf16, #tpu.memory_space<vmem>>, vector<8x128xbf16>
    tpu.vector_store %arg8[%c0_17, %c0_18], %24 {strides = array<i32>} : memref<8x128xbf16, #tpu.memory_space<vmem>>, vector<8x128xbf16>,
    return
  }
  func.func @transform_0(%arg0: i32) -> (i32, i32) {
    %c0_i32 = arith.constant 0 : i32
    %c0_i32_0 = arith.constant 0 : i32
    return %arg0, %c0_i32 : i32, i32
  }
  func.func @transform_1(%arg0: i32) -> (i32, i32) {
    %c0_i32 = arith.constant 0 : i32
    %c0_i32_0 = arith.constant 0 : i32
    %c0_i32_1 = arith.constant 0 : i32
    return %c0_i32, %c0_i32_0 : i32, i32
  }
  func.func @transform_2(%arg0: i32) -> (i32, i32) {
    %c0_i32 = arith.constant 0 : i32
    %c0_i32_0 = arith.constant 0 : i32
    %c0_i32_1 = arith.constant 0 : i32
    return %c0_i32, %c0_i32_0 : i32, i32
  }
  func.func @transform_3(%arg0: i32) -> (i32, i32) {
    %c0_i32 = arith.constant 0 : i32
    %c0_i32_0 = arith.constant 0 : i32
    %c0_i32_1 = arith.constant 0 : i32
    return %c0_i32, %c0_i32_0 : i32, i32
  }
  func.func @transform_4(%arg0: i32) -> (i32, i32) {
    %c0_i32 = arith.constant 0 : i32
    %c0_i32_0 = arith.constant 0 : i32
    %c0_i32_1 = arith.constant 0 : i32
    return %c0_i32, %c0_i32_0 : i32, i32
  }
  func.func @transform_5(%arg0: i32) -> (i32, i32) {
    %c0_i32 = arith.constant 0 : i32
    %c0_i32_0 = arith.constant 0 : i32
    %c0_i32_1 = arith.constant 0 : i32
    return %c0_i32, %c0_i32_0 : i32, i32
  }
  func.func @transform_6(%arg0: i32) -> (i32, i32) {
    %c0_i32 = arith.constant 0 : i32
    %c0_i32_0 = arith.constant 0 : i32
    %c0_i32_1 = arith.constant 0 : i32
    return %c0_i32, %c0_i32_0 : i32, i32
  }
  func.func @transform_7(%arg0: i32) -> (i32, i32) {
    %c0_i32 = arith.constant 0 : i32
    %c0_i32_0 = arith.constant 0 : i32
    return %arg0, %c0_i32 : i32, i32
  }
}

</mosaic_0001>

<bundles_post_ra>
// kernel: tpu_custom_call.1
= control target key start
LH: loop header
LB: loop body
LE: loop exit
PB: predicated region body
PF: predicated region fallthrough
CT: control target
= control target key end

     0   :  { %12 = vsyncpa [#allocation3], 0  ;;  %s4042_s0 = inlined_call_operand.hbm [shape: bf16[8,256], index: 0, kind: input, shape index: {}]   ;;  %s4043_s1 = inlined_call_operand.hbm [shape: bf16[256,1024], index: 1, kind: input, shape index: {}]   ;;  %s4044_s2 = inlined_call_operand.hbm [shape: bf16[1,1024], index: 2, kind: input, shape index: {}]   ;;  %s4045_s3 = inlined_call_operand.hbm [shape: bf16[1024,256], index: 3, kind: input, shape index: {}]   ;;  %s4046_s4 = inlined_call_operand.vmem [shape: bf16[1,256], index: 4, kind: input, shape index: {}]   ;;  %s4047_s5 = inlined_call_operand.hbm [shape: bf16[256,128], index: 5, kind: input, shape index: {}]   ;;  %s4048_s6 = inlined_call_operand.vmem [shape: f32[1,128], index: 6, kind: input, shape index: {}]   ;;  %s4049_s7 = inlined_call_operand.hbm [shape: bf16[8,128], index: 7, kind: output, shape index: {}]  }
   0x1   :  { %13 = vsyncpa [#allocation6], 0 }
   0x2   :  { %14 = vsyncpa [#allocation9], 0  ;;  %s31_s26 = sshll.u32 %s4043_s1, 4  ;;  %s32_s26 = int_to_ptr.hbm [resolvable:$true] %s31_s26 }
   0x3   :  { %15 = vsyncpa [#allocation4], 0  ;;  %s3906_s27 = smov [#allocation5]   ;;  %s55_s8 = sshll.u32 %s4045_s3, 4  ;;  %s56_s8 = int_to_ptr.hbm [resolvable:$true] %s55_s8 }
   0x4   :  { %s33_s28 = sshll.u32 %s3906_s27, 4  ;;  %s3907_s9 = smov 512   ;;  %s34_s28 = int_to_ptr.vmem [resolvable:$true] %s33_s28 }
   0x5   :  { %s3908_s10 = smov 32   ;;  %s3909_s11 = smov [#allocation8]  }
   0x6   :  { %39 = dma.hbm_to_vmem [thread:$0]  %s32_s26, 16384, %s34_s28, [#allocation6], %s3907_s9, %s3907_s9, %s3908_s10  }
   0x7   :  { %s57_s12 = sshll.u32 %s3909_s11, 4  ;;  %s3910_s13 = smov 128   ;;  %s58_s12 = int_to_ptr.vmem [resolvable:$true] %s57_s12 }
   0x8   :  { %s3911_s14 = smov 8   ;;  %s21_s16 = sshll.u32 %s4042_s0, 4  ;;  %s22_s16 = int_to_ptr.hbm [resolvable:$true] %s21_s16 }
   0x9   :  { %63 = dma.hbm_to_vmem [thread:$0]  %s56_s8, 16384, %s58_s12, [#allocation9], %s3910_s13, %s3910_s13, %s3911_s14  }
   0xa   :  { %s3912_s17 = smov [#allocation2]   ;;  %s45_s20 = sshll.u32 %s4044_s2, 4  ;;  %s46_s20 = int_to_ptr.hbm [resolvable:$true] %s45_s20 }
   0xb   :  { %s23_s18 = sshll.u32 %s3912_s17, 4  ;;  %s3913_s21 = smov [#allocation7]   ;;  %s24_s18 = int_to_ptr.vmem [resolvable:$true] %s23_s18 }
   0xc   :  { %26 = dma.hbm_to_vmem [thread:$0]  %s22_s16, 128, %s24_s18, [#allocation3]  }
   0xd   :  { %s47_s22 = sshll.u32 %s3913_s21, 4  ;;  %s70_s25 = sshll.u32 %s4047_s5, 4  ;;  %s48_s22 = int_to_ptr.vmem [resolvable:$true] %s47_s22  ;;  %s71_s25 = int_to_ptr.hbm [resolvable:$true] %s70_s25 }
   0xe   :  { %50 = dma.hbm_to_vmem [thread:$0]  %s46_s20, 128, %s48_s22, [#allocation6]  }
   0xf   :  { %s3914_s0 = smov [#allocation10]   ;;  %s3915_s27 = smov 64  }
  0x10   :  { %s72_s26 = sshll.u32 %s3914_s0, 4  ;;  %s3916_s28 = smov 4   ;;  %s73_s26 = int_to_ptr.vmem [resolvable:$true] %s72_s26 }
  0x11   :  { %78 = dma.hbm_to_vmem [thread:$0]  %s71_s25, 2048, %s73_s26, [#allocation9], %s3915_s27, %s3915_s27, %s3916_s28  }
  0x12   :  { %3898 = dma.done.wait [#allocation3], 128  }
  0x13   :  { %3899 = vsyncadd [#allocation3], 4294967168 }
  0x14   :  { %3900 = dma.done.wait [#allocation6], 16512  }
  0x15   :  { %3901 = vsyncadd [#allocation6], 4294950784 }
  0x16   :  { %3902 = dma.done.wait [#allocation9], 18432  }
  0x17   :  { %3903 = vsyncadd [#allocation9], 4294948864  ;;  %v2607_v0 = vld [vmem:[#allocation5 + $0x1c0] sm:$0xf]  ;;  %v3525_v5 = vld [vmem:[#allocation5 + $0x1c4] sm:$0xf] }
  0x18   :  { %v3529_v1 = vld [vmem:[#allocation5 + $0x1dc] sm:$0xf0]  ;;  %v2609_v6 = vld [vmem:[#allocation5 + $0x1e0] sm:$0xf0]  ;;  %s3917_s30 = smov [#allocation11]   ;;  %s2369_s11 = sshll.u32 %s4049_s7, 4  ;;  %s2370_s11 = int_to_ptr.hbm [resolvable:$true] %s2369_s11 }
  0x19   :  { %v2863_v2 = vld [vmem:[#allocation5 + $0x3c0] sm:$0xf]  ;;  %v2608_v3 = vor.u32 %v3529_v1, %v2607_v0  ;;  %v2612_v8 = vor.u32 %v3525_v5, %v2609_v6  ;;  %v3589_v9 = vld [vmem:[#allocation5 + $0x3c4] sm:$0xf]  ;;  %s2367_s8 = sshll.u32 %s3917_s30, 4  ;;  %s2368_s8 = int_to_ptr.vmem [resolvable:$true] %s2367_s8 }
  0x1a   :  { %v3593_v4 = vld [vmem:[#allocation5 + $0x3dc] sm:$0xf0]  ;;  %v2865_v10 = vld [vmem:[#allocation5 + $0x3e0] sm:$0xf0] }
  0x1b   :  { %v2864_v7 = vor.u32 %v3593_v4, %v2863_v2  ;;  %v2575_v11 = vld [vmem:[#allocation5 + $0x180] sm:$0xf]  ;;  %877 = vmatpush.bf16.msra.mxu0 %v2608_v3  ;;  %v2868_v12 = vor.u32 %v3589_v9, %v2865_v10  ;;  %903 = vmatpush.bf16.msra.mxu2 %v2612_v8  ;;  %v3517_v18 = vld [vmem:[#allocation5 + $0x184] sm:$0xf] }
  0x1c   :  { %v3521_v13 = vld [vmem:[#allocation5 + $0x19c] sm:$0xf0]  ;;  %v2577_v19 = vld [vmem:[#allocation5 + $0x1a0] sm:$0xf0] }
  0x1d   :  { %v2831_v14 = vld [vmem:[#allocation5 + $0x380] sm:$0xf]  ;;  %890 = vmatpush.bf16.msra.mxu1 %v2864_v7  ;;  %v2576_v16 = vor.u32 %v3521_v13, %v2575_v11  ;;  %v3581_v20 = vld [vmem:[#allocation5 + $0x384] sm:$0xf]  ;;  %916 = vmatpush.bf16.msra.mxu3 %v2868_v12  ;;  %v2580_v21 = vor.u32 %v3517_v18, %v2577_v19 }
  0x1e   :  { %v3585_v15 = vld [vmem:[#allocation5 + $0x39c] sm:$0xf0]  ;;  %v2833_v22 = vld [vmem:[#allocation5 + $0x3a0] sm:$0xf0] }
  0x1f   :  { %v2832_v17 = vor.u32 %v3585_v15, %v2831_v14  ;;  %v2543_v23 = vld [vmem:[#allocation5 + $0x140] sm:$0xf]  ;;  %v2836_v25 = vor.u32 %v3581_v20, %v2833_v22  ;;  %v3509_v28 = vld [vmem:[#allocation5 + $0x144] sm:$0xf]  ;;  %878 = vmatpush.bf16.msra.mxu0 %v2576_v16  ;;  %904 = vmatpush.bf16.msra.mxu2 %v2580_v21 }
  0x20   :  { %v3513_v24 = vld [vmem:[#allocation5 + $0x15c] sm:$0xf0]  ;;  %v2545_v30 = vld [vmem:[#allocation5 + $0x160] sm:$0xf0] }
  0x21   :  { %v2799_v26 = vld [vmem:[#allocation5 + $0x340] sm:$0xf]  ;;  %v2544_v29 = vor.u32 %v3513_v24, %v2543_v23  ;;  %v3573_v31 = vld [vmem:[#allocation5 + $0x344] sm:$0xf]  ;;  %891 = vmatpush.bf16.msra.mxu1 %v2832_v17  ;;  %v2548_v34 = vor.u32 %v3509_v28, %v2545_v30  ;;  %917 = vmatpush.bf16.msra.mxu3 %v2836_v25  ;;  %v2615_v28 = vld [vmem:[#allocation5 + $0x1c8] sm:$0xf] }
  0x22   :  { %v3577_v27 = vld [vmem:[#allocation5 + $0x35c] sm:$0xf0]  ;;  %v2801_v32 = vld [vmem:[#allocation5 + $0x360] sm:$0xf0]  ;;  %v2871_v30 = vld [vmem:[#allocation5 + $0x3c8] sm:$0xf] }
  0x23   :  { %v2800_v33 = vor.u32 %v3577_v27, %v2799_v26  ;;  %v2511_v35 = vld [vmem:[#allocation5 + $0x100] sm:$0xf]  ;;  %v2804_v38 = vor.u32 %v3573_v31, %v2801_v32  ;;  %v3501_v40 = vld [vmem:[#allocation5 + $0x104] sm:$0xf]  ;;  %879 = vmatpush.bf16.msra.mxu0 %v2544_v29  ;;  %905 = vmatpush.bf16.msra.mxu2 %v2548_v34  ;;  %v3530_v29 = vld [vmem:[#allocation5 + $0x1e4] sm:$0xf0] }
  0x24   :  { %v3505_v36 = vld [vmem:[#allocation5 + $0x11c] sm:$0xf0]  ;;  %v2513_v41 = vld [vmem:[#allocation5 + $0x120] sm:$0xf0]  ;;  %v3594_v32 = vld [vmem:[#allocation5 + $0x3e4] sm:$0xf0] }
  0x25   :  { %v2767_v37 = vld [vmem:[#allocation5 + $0x300] sm:$0xf]  ;;  %v3565_v42 = vld [vmem:[#allocation5 + $0x304] sm:$0xf]  ;;  %v2512_v44 = vor.u32 %v3505_v36, %v2511_v35  ;;  %892 = vmatpush.bf16.msra.mxu1 %v2800_v33  ;;  %v2516_v46 = vor.u32 %v3501_v40, %v2513_v41  ;;  %918 = vmatpush.bf16.msra.mxu3 %v2804_v38  ;;  %v3526_v33 = vld [vmem:[#allocation5 + $0x1cc] sm:$0xf]  ;;  %v2616_v40 = vor.u32 %v3530_v29, %v2615_v28 }
  0x26   :  { %v3569_v39 = vld [vmem:[#allocation5 + $0x31c] sm:$0xf0]  ;;  %v2769_v43 = vld [vmem:[#allocation5 + $0x320] sm:$0xf0]  ;;  %v2617_v34 = vld [vmem:[#allocation5 + $0x1e8] sm:$0xf0]  ;;  %v2872_v41 = vor.u32 %v3594_v32, %v2871_v30 }
  0x27   :  { %v2768_v45 = vor.u32 %v3569_v39, %v2767_v37  ;;  %v2479_v47 = vld [vmem:[#allocation5 + $0xc0] sm:$0xf]  ;;  %v2772_v50 = vor.u32 %v3565_v42, %v2769_v43  ;;  %v3493_v52 = vld [vmem:[#allocation5 + $0xc4] sm:$0xf]  ;;  %880 = vmatpush.bf16.msra.mxu0 %v2512_v44  ;;  %906 = vmatpush.bf16.msra.mxu2 %v2516_v46  ;;  %v3590_v37 = vld [vmem:[#allocation5 + $0x3cc] sm:$0xf]  ;;  %v2620_v42 = vor.u32 %v3526_v33, %v2617_v34 }
  0x28   :  { %v3497_v48 = vld [vmem:[#allocation5 + $0xdc] sm:$0xf0]  ;;  %v2481_v53 = vld [vmem:[#allocation5 + $0xe0] sm:$0xf0]  ;;  %v2873_v38 = vld [vmem:[#allocation5 + $0x3e8] sm:$0xf0] }
  0x29   :  { %v2735_v49 = vld [vmem:[#allocation5 + $0x2c0] sm:$0xf]  ;;  %v3557_v54 = vld [vmem:[#allocation5 + $0x2c4] sm:$0xf]  ;;  %v2480_v56 = vor.u32 %v3497_v48, %v2479_v47  ;;  %893 = vmatpush.bf16.msra.mxu1 %v2768_v45  ;;  %v2484_v58 = vor.u32 %v3493_v52, %v2481_v53  ;;  %919 = vmatpush.bf16.msra.mxu3 %v2772_v50  ;;  %v2583_v43 = vld [vmem:[#allocation5 + $0x188] sm:$0xf]  ;;  %v2876_v46 = vor.u32 %v3590_v37, %v2873_v38 }
  0x2a   :  { %v3561_v51 = vld [vmem:[#allocation5 + $0x2dc] sm:$0xf0]  ;;  %v2737_v55 = vld [vmem:[#allocation5 + $0x2e0] sm:$0xf0]  ;;  %v3522_v44 = vld [vmem:[#allocation5 + $0x1a4] sm:$0xf0] }
  0x2b   :  { %v2736_v57 = vor.u32 %v3561_v51, %v2735_v49  ;;  %v2447_v59 = vld [vmem:[#allocation5 + $0x80] sm:$0xf]  ;;  %v2740_v62 = vor.u32 %v3557_v54, %v2737_v55  ;;  %v3485_v0 = vld [vmem:[#allocation5 + $0x84] sm:$0xf]  ;;  %881 = vmatpush.bf16.msra.mxu0 %v2480_v56  ;;  %907 = vmatpush.bf16.msra.mxu2 %v2484_v58  ;;  %v2839_v45 = vld [vmem:[#allocation5 + $0x388] sm:$0xf]  ;;  %v2584_v53 = vor.u32 %v3522_v44, %v2583_v43 }
  0x2c   :  { %v3489_v60 = vld [vmem:[#allocation5 + $0x9c] sm:$0xf0]  ;;  %v2449_v1 = vld [vmem:[#allocation5 + $0xa0] sm:$0xf0]  ;;  %v3586_v47 = vld [vmem:[#allocation5 + $0x3a4] sm:$0xf0] }
  0x2d   :  { %v2703_v61 = vld [vmem:[#allocation5 + $0x280] sm:$0xf]  ;;  %v3549_v2 = vld [vmem:[#allocation5 + $0x284] sm:$0xf]  ;;  %v2448_v4 = vor.u32 %v3489_v60, %v2447_v59  ;;  %894 = vmatpush.bf16.msra.mxu1 %v2736_v57  ;;  %v2452_v6 = vor.u32 %v3485_v0, %v2449_v1  ;;  %920 = vmatpush.bf16.msra.mxu3 %v2740_v62  ;;  %v3518_v48 = vld [vmem:[#allocation5 + $0x18c] sm:$0xf]  ;;  %v2840_v56 = vor.u32 %v3586_v47, %v2839_v45 }
  0x2e   :  { %v3553_v63 = vld [vmem:[#allocation5 + $0x29c] sm:$0xf0]  ;;  %v2705_v3 = vld [vmem:[#allocation5 + $0x2a0] sm:$0xf0]  ;;  %v2585_v49 = vld [vmem:[#allocation5 + $0x1a8] sm:$0xf0] }
  0x2f   :  { %v2704_v5 = vor.u32 %v3553_v63, %v2703_v61  ;;  %v2415_v7 = vld [vmem:[#allocation5 + $0x40] sm:$0xf]  ;;  %v2708_v10 = vor.u32 %v3549_v2, %v2705_v3  ;;  %v3477_v12 = vld [vmem:[#allocation5 + $0x44] sm:$0xf]  ;;  %882 = vmatpush.bf16.msra.mxu0 %v2448_v4  ;;  %908 = vmatpush.bf16.msra.mxu2 %v2452_v6  ;;  %v3582_v50 = vld [vmem:[#allocation5 + $0x38c] sm:$0xf]  ;;  %v2588_v57 = vor.u32 %v3518_v48, %v2585_v49 }
  0x30   :  { %v3481_v8 = vld [vmem:[#allocation5 + $0x5c] sm:$0xf0]  ;;  %v2417_v13 = vld [vmem:[#allocation5 + $0x60] sm:$0xf0]  ;;  %v2841_v51 = vld [vmem:[#allocation5 + $0x3a8] sm:$0xf0] }
  0x31   :  { %v2671_v9 = vld [vmem:[#allocation5 + $0x240] sm:$0xf]  ;;  %v3541_v14 = vld [vmem:[#allocation5 + $0x244] sm:$0xf]  ;;  %v2416_v16 = vor.u32 %v3481_v8, %v2415_v7  ;;  %895 = vmatpush.bf16.msra.mxu1 %v2704_v5  ;;  %v2420_v20 = vor.u32 %v3477_v12, %v2417_v13  ;;  %921 = vmatpush.bf16.msra.mxu3 %v2708_v10  ;;  %v101_v52 = vld [vmem:[#allocation2] sm:$0xff]  ;;  %v2844_v61 = vor.u32 %v3582_v50, %v2841_v51 }
  0x32   :  { %v3545_v11 = vld [vmem:[#allocation5 + $0x25c] sm:$0xf0]  ;;  %v2673_v15 = vld [vmem:[#allocation5 + $0x260] sm:$0xf0]  ;;  %v231_v54 = vunpack.c.l.b16 %v101_v52  ;;  %v232_v55 = vunpack.c.h.b16 %v101_v52  ;;  %v2551_v58 = vld [vmem:[#allocation5 + $0x148] sm:$0xf] }
  0x33   :  { %v2383_v17 = vld [vmem:[#allocation5] sm:$0xf]  ;;  %v2672_v19 = vor.u32 %v3545_v11, %v2671_v9  ;;  %v3469_v23 = vld [vmem:[#allocation5 + $0x4] sm:$0xf]  ;;  %v2676_v24 = vor.u32 %v3541_v14, %v2673_v15  ;;  %883 = vmatpush.bf16.msra.mxu0 %v2416_v16  ;;  %909 = vmatpush.bf16.msra.mxu2 %v2420_v20  ;;  %v3514_v59 = vld [vmem:[#allocation5 + $0x164] sm:$0xf0] }
  0x34   :  { %v3473_v18 = vld [vmem:[#allocation5 + $0x1c] sm:$0xf0]  ;;  %v2385_v25 = vld [vmem:[#allocation5 + $0x20] sm:$0xf0]  ;;  %v2807_v60 = vld [vmem:[#allocation5 + $0x348] sm:$0xf]  ;;  %v3973_v1 = vpack.c.b16 %v231_v54, %v231_v54  ;;  %v3975_v4 = vpack.c.b16 %v232_v55, %v232_v55  ;;  %v2552_v5 = vor.u32 %v3514_v59, %v2551_v58 }
  0x35   :  { %v2639_v21 = vld [vmem:[#allocation5 + $0x200] sm:$0xf]  ;;  %v3533_v26 = vld [vmem:[#allocation5 + $0x204] sm:$0xf]  ;;  %v2384_v31 = vor.u32 %v3473_v18, %v2383_v17  ;;  %896 = vmatpush.bf16.msra.mxu1 %v2672_v19  ;;  %v2388_v36 = vor.u32 %v3469_v23, %v2385_v25  ;;  %922 = vmatpush.bf16.msra.mxu3 %v2676_v24  ;;  %v3578_v62 = vld [vmem:[#allocation5 + $0x364] sm:$0xf0] }
  0x36   :  { %v3537_v22 = vld [vmem:[#allocation5 + $0x21c] sm:$0xf0]  ;;  %v2641_v27 = vld [vmem:[#allocation5 + $0x220] sm:$0xf0]  ;;  %v3510_v63 = vld [vmem:[#allocation5 + $0x14c] sm:$0xf]  ;;  %v2808_v6 = vor.u32 %v3578_v62, %v2807_v60 }
  0x37   :  { %v2640_v35 = vor.u32 %v3537_v22, %v2639_v21  ;;  %v2644_v39 = vor.u32 %v3533_v26, %v2641_v27  ;;  %884 = vmatpush.bf16.msra.mxu0 %v2384_v31  ;;  %910 = vmatpush.bf16.msra.mxu2 %v2388_v36  ;;  %v2553_v0 = vld [vmem:[#allocation5 + $0x168] sm:$0xf0]  ;;  %v2519_v8 = vld [vmem:[#allocation5 + $0x108] sm:$0xf] }
  0x38   :  { %v3574_v2 = vld [vmem:[#allocation5 + $0x34c] sm:$0xf]  ;;  %v2556_v7 = vor.u32 %v3510_v63, %v2553_v0  ;;  %v3506_v9 = vld [vmem:[#allocation5 + $0x124] sm:$0xf0] }
  0x39   :  { %897 = vmatpush.bf16.msra.mxu1 %v2640_v35  ;;  %923 = vmatpush.bf16.msra.mxu3 %v2644_v39  ;;  %v2809_v3 = vld [vmem:[#allocation5 + $0x368] sm:$0xf0]  ;;  %v2775_v10 = vld [vmem:[#allocation5 + $0x308] sm:$0xf]  ;;  %v2520_v17 = vor.u32 %v3506_v9, %v2519_v8  ;;  %v3527_v8 = vld [vmem:[#allocation5 + $0x1d4] sm:$0xf] }
  0x3a   :  { %911 = vmatmul.bf16.vlgmr.msra.gmra.mxu2 %v3973_v1  ;;  %v2812_v11 = vor.u32 %v3574_v2, %v2809_v3  ;;  %v3570_v12 = vld [vmem:[#allocation5 + $0x324] sm:$0xf0]  ;;  %v3502_v13 = vld [vmem:[#allocation5 + $0x10c] sm:$0xf]  ;;  %885 = vmatmul.bf16.vlgmr.msra.gmra.mxu0 %v3973_v1  ;;  %v2623_v2 = vld [vmem:[#allocation5 + $0x1d0] sm:$0xf] }
  0x3b   :  { %929 = vmatpush.bf16.msrb.mxu0 %v2616_v40  ;;  %955 = vmatpush.bf16.msrb.mxu2 %v2620_v42  ;;  %v2521_v14 = vld [vmem:[#allocation5 + $0x128] sm:$0xf0]  ;;  %v2776_v18 = vor.u32 %v3570_v12, %v2775_v10  ;;  %v2487_v20 = vld [vmem:[#allocation5 + $0xc8] sm:$0xf]  ;;  %v3531_v3 = vld [vmem:[#allocation5 + $0x1ec] sm:$0xf0] }
  0x3c   :  { %v3566_v15 = vld [vmem:[#allocation5 + $0x30c] sm:$0xf]  ;;  %924 = vmatmul.bf16.vlgmr.msra.gmra.mxu3 %v3975_v4  ;;  %898 = vmatmul.bf16.vlgmr.msra.gmra.mxu1 %v3975_v4  ;;  %v2524_v19 = vor.u32 %v3502_v13, %v2521_v14  ;;  %v3498_v21 = vld [vmem:[#allocation5 + $0xe4] sm:$0xf0]  ;;  %v2625_v9 = vld [vmem:[#allocation5 + $0x1f0] sm:$0xf0] }
  0x3d   :  { %942 = vmatpush.bf16.msrb.mxu1 %v2872_v41  ;;  %968 = vmatpush.bf16.msrb.mxu3 %v2876_v46  ;;  %v2777_v16 = vld [vmem:[#allocation5 + $0x328] sm:$0xf0]  ;;  %v2743_v22 = vld [vmem:[#allocation5 + $0x2c8] sm:$0xf]  ;;  %v2488_v29 = vor.u32 %v3498_v21, %v2487_v20  ;;  %v3591_v12 = vld [vmem:[#allocation5 + $0x3d4] sm:$0xf] }
  0x3e   :  { %v2780_v23 = vor.u32 %v3566_v15, %v2777_v16  ;;  %v3562_v24 = vld [vmem:[#allocation5 + $0x2e4] sm:$0xf0]  ;;  %v3494_v25 = vld [vmem:[#allocation5 + $0xcc] sm:$0xf]  ;;  %v2881_v13 = vld [vmem:[#allocation5 + $0x3f0] sm:$0xf0]  ;;  %v2624_v15 = vor.u32 %v3531_v3, %v2623_v2 }
  0x3f   :  { %930 = vmatpush.bf16.msrb.mxu0 %v2584_v53  ;;  %956 = vmatpush.bf16.msrb.mxu2 %v2588_v57  ;;  %v2489_v26 = vld [vmem:[#allocation5 + $0xe8] sm:$0xf0]  ;;  %v2744_v30 = vor.u32 %v3562_v24, %v2743_v22  ;;  %v2455_v32 = vld [vmem:[#allocation5 + $0x88] sm:$0xf]  ;;  %v2847_v20 = vld [vmem:[#allocation5 + $0x390] sm:$0xf]  ;;  %v2884_v21 = vor.u32 %v3591_v12, %v2881_v13 }
  0x40   :  { %v3558_v27 = vld [vmem:[#allocation5 + $0x2cc] sm:$0xf]  ;;  %v2492_v31 = vor.u32 %v3494_v25, %v2489_v26  ;;  %v3490_v33 = vld [vmem:[#allocation5 + $0xa4] sm:$0xf0]  ;;  %v3587_v22 = vld [vmem:[#allocation5 + $0x3ac] sm:$0xf0] }
  0x41   :  { %943 = vmatpush.bf16.msrb.mxu1 %v2840_v56  ;;  %969 = vmatpush.bf16.msrb.mxu3 %v2844_v61  ;;  %v2745_v28 = vld [vmem:[#allocation5 + $0x2e8] sm:$0xf0]  ;;  %v2711_v34 = vld [vmem:[#allocation5 + $0x288] sm:$0xf]  ;;  %v2456_v41 = vor.u32 %v3490_v33, %v2455_v32  ;;  %v2593_v24 = vld [vmem:[#allocation5 + $0x1b0] sm:$0xf0] }
  0x42   :  { %v2748_v35 = vor.u32 %v3558_v27, %v2745_v28  ;;  %v3554_v36 = vld [vmem:[#allocation5 + $0x2a4] sm:$0xf0]  ;;  %v3486_v37 = vld [vmem:[#allocation5 + $0x8c] sm:$0xf]  ;;  %v3583_v25 = vld [vmem:[#allocation5 + $0x394] sm:$0xf]  ;;  %v2848_v28 = vor.u32 %v3587_v22, %v2847_v20 }
  0x43   :  { %931 = vmatpush.bf16.msrb.mxu0 %v2552_v5  ;;  %957 = vmatpush.bf16.msrb.mxu2 %v2556_v7  ;;  %v2457_v38 = vld [vmem:[#allocation5 + $0xa8] sm:$0xf0]  ;;  %v2712_v42 = vor.u32 %v3554_v36, %v2711_v34  ;;  %v2423_v44 = vld [vmem:[#allocation5 + $0x48] sm:$0xf]  ;;  %v2879_v5 = vld [vmem:[#allocation5 + $0x3d0] sm:$0xf] }
  0x44   :  { %v3550_v39 = vld [vmem:[#allocation5 + $0x28c] sm:$0xf]  ;;  %v2460_v43 = vor.u32 %v3486_v37, %v2457_v38  ;;  %v3482_v45 = vld [vmem:[#allocation5 + $0x64] sm:$0xf0]  ;;  %v3595_v7 = vld [vmem:[#allocation5 + $0x3ec] sm:$0xf0] }
  0x45   :  { %944 = vmatpush.bf16.msrb.mxu1 %v2808_v6  ;;  %970 = vmatpush.bf16.msrb.mxu3 %v2812_v11  ;;  %v2713_v40 = vld [vmem:[#allocation5 + $0x2a8] sm:$0xf0]  ;;  %v2679_v46 = vld [vmem:[#allocation5 + $0x248] sm:$0xf]  ;;  %v2424_v53 = vor.u32 %v3482_v45, %v2423_v44  ;;  %v2880_v16 = vor.u32 %v3595_v7, %v2879_v5  ;;  %v2849_v26 = vld [vmem:[#allocation5 + $0x3b0] sm:$0xf0] }
  0x46   :  { %v2716_v47 = vor.u32 %v3550_v39, %v2713_v40  ;;  %v3546_v48 = vld [vmem:[#allocation5 + $0x264] sm:$0xf0]  ;;  %v3478_v49 = vld [vmem:[#allocation5 + $0x4c] sm:$0xf]  ;;  %v2815_v32 = vld [vmem:[#allocation5 + $0x350] sm:$0xf]  ;;  %v2852_v33 = vor.u32 %v3583_v25, %v2849_v26 }
  0x47   :  { %932 = vmatpush.bf16.msrb.mxu0 %v2520_v17  ;;  %958 = vmatpush.bf16.msrb.mxu2 %v2524_v19  ;;  %v2425_v50 = vld [vmem:[#allocation5 + $0x68] sm:$0xf0]  ;;  %v2391_v54 = vld [vmem:[#allocation5 + $0x8] sm:$0xf]  ;;  %v2680_v56 = vor.u32 %v3546_v48, %v2679_v46  ;;  %v2628_v17 = vor.u32 %v3527_v8, %v2625_v9  ;;  %v3523_v19 = vld [vmem:[#allocation5 + $0x1ac] sm:$0xf0] }
  0x48   :  { %v3542_v51 = vld [vmem:[#allocation5 + $0x24c] sm:$0xf]  ;;  %v3474_v55 = vld [vmem:[#allocation5 + $0x24] sm:$0xf0]  ;;  %v2428_v57 = vor.u32 %v3478_v49, %v2425_v50  ;;  %v3579_v34 = vld [vmem:[#allocation5 + $0x36c] sm:$0xf0] }
  0x49   :  { %945 = vmatpush.bf16.msrb.mxu1 %v2776_v18  ;;  %971 = vmatpush.bf16.msrb.mxu3 %v2780_v23  ;;  %v2681_v52 = vld [vmem:[#allocation5 + $0x268] sm:$0xf0]  ;;  %v2647_v58 = vld [vmem:[#allocation5 + $0x208] sm:$0xf]  ;;  %v2392_v6 = vor.u32 %v3474_v55, %v2391_v54  ;;  %v2591_v18 = vld [vmem:[#allocation5 + $0x190] sm:$0xf]  ;;  %v2816_v40 = vor.u32 %v3579_v34, %v2815_v32 }
  0x4a   :  { %v3538_v59 = vld [vmem:[#allocation5 + $0x224] sm:$0xf0]  ;;  %v3470_v60 = vld [vmem:[#allocation5 + $0xc] sm:$0xf]  ;;  %v2684_v61 = vor.u32 %v3542_v51, %v2681_v52  ;;  %v3519_v23 = vld [vmem:[#allocation5 + $0x194] sm:$0xf]  ;;  %v2592_v27 = vor.u32 %v3523_v19, %v2591_v18 }
  0x4b   :  { %933 = vmatpush.bf16.msrb.mxu0 %v2488_v29  ;;  %959 = vmatpush.bf16.msrb.mxu2 %v2492_v31  ;;  %v2393_v62 = vld [vmem:[#allocation5 + $0x28] sm:$0xf0]  ;;  %v2648_v10 = vor.u32 %v3538_v59, %v2647_v58  ;;  %v2596_v29 = vor.u32 %v3519_v23, %v2593_v24  ;;  %v3515_v31 = vld [vmem:[#allocation5 + $0x16c] sm:$0xf0]  ;;  %v2561_v36 = vld [vmem:[#allocation5 + $0x170] sm:$0xf0] }
  0x4c   :  { %v3534_v63 = vld [vmem:[#allocation5 + $0x20c] sm:$0xf]  ;;  %v2396_v11 = vor.u32 %v3470_v60, %v2393_v62  ;;  %v3575_v37 = vld [vmem:[#allocation5 + $0x354] sm:$0xf]  ;;  %v2783_v44 = vld [vmem:[#allocation5 + $0x310] sm:$0xf] }
  0x4d   :  { %946 = vmatpush.bf16.msrb.mxu1 %v2744_v30  ;;  %972 = vmatpush.bf16.msrb.mxu3 %v2748_v35  ;;  %v2649_v0 = vld [vmem:[#allocation5 + $0x228] sm:$0xf0]  ;;  %v2559_v30 = vld [vmem:[#allocation5 + $0x150] sm:$0xf]  ;;  %v3511_v35 = vld [vmem:[#allocation5 + $0x154] sm:$0xf] }
  0x4e   :  { %v2652_v14 = vor.u32 %v3534_v63, %v2649_v0  ;;  %v2817_v38 = vld [vmem:[#allocation5 + $0x370] sm:$0xf0]  ;;  %v2560_v39 = vor.u32 %v3515_v31, %v2559_v30  ;;  %v3571_v46 = vld [vmem:[#allocation5 + $0x32c] sm:$0xf0] }
  0x4f   :  { %934 = vmatpush.bf16.msrb.mxu0 %v2456_v41  ;;  %960 = vmatpush.bf16.msrb.mxu2 %v2460_v43  ;;  %v2564_v41 = vor.u32 %v3511_v35, %v2561_v36  ;;  %v3507_v43 = vld [vmem:[#allocation5 + $0x12c] sm:$0xf0]  ;;  %v2820_v45 = vor.u32 %v3575_v37, %v2817_v38  ;;  %v2529_v48 = vld [vmem:[#allocation5 + $0x130] sm:$0xf0]  ;;  %v2784_v52 = vor.u32 %v3571_v46, %v2783_v44  ;;  %v2631_v37 = vld [vmem:[#allocation5 + $0x1d8] sm:$0xf] }
  0x50   :  { %v3567_v49 = vld [vmem:[#allocation5 + $0x314] sm:$0xf]  ;;  %v2495_v54 = vld [vmem:[#allocation5 + $0xd0] sm:$0xf]  ;;  %v3532_v38 = vld [vmem:[#allocation5 + $0x1f4] sm:$0xf0] }
  0x51   :  { %947 = vmatpush.bf16.msrb.mxu1 %v2712_v42  ;;  %973 = vmatpush.bf16.msrb.mxu3 %v2716_v47  ;;  %v2527_v42 = vld [vmem:[#allocation5 + $0x110] sm:$0xf]  ;;  %v3503_v47 = vld [vmem:[#allocation5 + $0x114] sm:$0xf]  ;;  %v3592_v46 = vld [vmem:[#allocation5 + $0x3dc] sm:$0xf] }
  0x52   :  { %v2785_v50 = vld [vmem:[#allocation5 + $0x330] sm:$0xf0]  ;;  %v2528_v51 = vor.u32 %v3507_v43, %v2527_v42  ;;  %v3499_v55 = vld [vmem:[#allocation5 + $0xec] sm:$0xf0]  ;;  %v3528_v42 = vld [vmem:[#allocation5 + $0x1dc] sm:$0xf] }
  0x53   :  { %935 = vmatpush.bf16.msrb.mxu0 %v2424_v53  ;;  %961 = vmatpush.bf16.msrb.mxu2 %v2428_v57  ;;  %v2532_v53 = vor.u32 %v3503_v47, %v2529_v48  ;;  %v2788_v57 = vor.u32 %v3567_v49, %v2785_v50  ;;  %v3563_v58 = vld [vmem:[#allocation5 + $0x2ec] sm:$0xf0]  ;;  %v3495_v59 = vld [vmem:[#allocation5 + $0xd4] sm:$0xf]  ;;  %v2496_v63 = vor.u32 %v3499_v55, %v2495_v54  ;;  %v2633_v43 = vld [vmem:[#allocation5 + $0x1f8] sm:$0xf0] }
  0x54   :  { %v2497_v60 = vld [vmem:[#allocation5 + $0xf0] sm:$0xf0]  ;;  %v2463_v3 = vld [vmem:[#allocation5 + $0x90] sm:$0xf]  ;;  %v2889_v47 = vld [vmem:[#allocation5 + $0x3f8] sm:$0xf0]  ;;  %v2632_v49 = vor.u32 %v3532_v38, %v2631_v37 }
  0x55   :  { %948 = vmatpush.bf16.msrb.mxu1 %v2680_v56  ;;  %974 = vmatpush.bf16.msrb.mxu3 %v2684_v61  ;;  %v2751_v56 = vld [vmem:[#allocation5 + $0x2d0] sm:$0xf]  ;;  %v3559_v61 = vld [vmem:[#allocation5 + $0x2d4] sm:$0xf]  ;;  %v2500_v2 = vor.u32 %v3495_v59, %v2497_v60  ;;  %v2855_v54 = vld [vmem:[#allocation5 + $0x398] sm:$0xf]  ;;  %v2892_v55 = vor.u32 %v3592_v46, %v2889_v47 }
  0x56   :  { %v2753_v62 = vld [vmem:[#allocation5 + $0x2f0] sm:$0xf0]  ;;  %v2752_v0 = vor.u32 %v3563_v58, %v2751_v56  ;;  %v3491_v5 = vld [vmem:[#allocation5 + $0xac] sm:$0xf0]  ;;  %v3588_v56 = vld [vmem:[#allocation5 + $0x3b4] sm:$0xf0] }
  0x57   :  { %936 = vmatpush.bf16.msrb.mxu0 %v2392_v6  ;;  %962 = vmatpush.bf16.msrb.mxu2 %v2396_v11  ;;  %v2719_v6 = vld [vmem:[#allocation5 + $0x290] sm:$0xf]  ;;  %v2756_v7 = vor.u32 %v3559_v61, %v2753_v62  ;;  %v3487_v9 = vld [vmem:[#allocation5 + $0x94] sm:$0xf]  ;;  %v2464_v13 = vor.u32 %v3491_v5, %v2463_v3  ;;  %v2601_v58 = vld [vmem:[#allocation5 + $0x1b8] sm:$0xf0]  ;;  %v2856_v62 = vor.u32 %v3588_v56, %v2855_v54 }
  0x58   :  { %v3555_v8 = vld [vmem:[#allocation5 + $0x2ac] sm:$0xf0]  ;;  %v3551_v11 = vld [vmem:[#allocation5 + $0x294] sm:$0xf]  ;;  %v3584_v59 = vld [vmem:[#allocation5 + $0x39c] sm:$0xf] }
  0x59   :  { %949 = vmatpush.bf16.msrb.mxu1 %v2648_v10  ;;  %975 = vmatpush.bf16.msrb.mxu3 %v2652_v14  ;;  %v2465_v10 = vld [vmem:[#allocation5 + $0xb0] sm:$0xf0]  ;;  %v2720_v14 = vor.u32 %v3555_v8, %v2719_v6  ;;  %v2687_v18 = vld [vmem:[#allocation5 + $0x250] sm:$0xf]  ;;  %v2857_v60 = vld [vmem:[#allocation5 + $0x3b8] sm:$0xf0] }
  0x5a   :  { %963 = vmatmul.bf16.vlgmr.msrb.gmra.mxu2 %v3973_v1  ;;  %937 = vmatmul.bf16.vlgmr.msrb.gmra.mxu0 %v3973_v1  ;;  %v2721_v12 = vld [vmem:[#allocation5 + $0x2b0] sm:$0xf0]  ;;  %v3547_v20 = vld [vmem:[#allocation5 + $0x26c] sm:$0xf0]  ;;  %v2823_v3 = vld [vmem:[#allocation5 + $0x358] sm:$0xf]  ;;  %v2860_v5 = vor.u32 %v3584_v59, %v2857_v60 }
  0x5b   :  { %981 = vmatpush.bf16.msra.mxu0 %v2624_v15  ;;  %1007 = vmatpush.bf16.msra.mxu2 %v2628_v17  ;;  %v2468_v15 = vor.u32 %v3487_v9, %v2465_v10  ;;  %v3483_v17 = vld [vmem:[#allocation5 + $0x6c] sm:$0xf0]  ;;  %v2724_v19 = vor.u32 %v3551_v11, %v2721_v12  ;;  %v2433_v22 = vld [vmem:[#allocation5 + $0x70] sm:$0xf0]  ;;  %v3580_v6 = vld [vmem:[#allocation5 + $0x374] sm:$0xf0] }
  0x5c   :  { %976 = vmatmul.bf16.vlgmr.msrb.gmra.mxu3 %v3975_v4  ;;  %950 = vmatmul.bf16.vlgmr.msrb.gmra.mxu1 %v3975_v4  ;;  %v3543_v23 = vld [vmem:[#allocation5 + $0x254] sm:$0xf]  ;;  %v2399_v26 = vld [vmem:[#allocation5 + $0x10] sm:$0xf]  ;;  %v2569_v8 = vld [vmem:[#allocation5 + $0x178] sm:$0xf0]  ;;  %v2824_v12 = vor.u32 %v3580_v6, %v2823_v3 }
  0x5d   :  { %994 = vmatpush.bf16.msra.mxu1 %v2880_v16  ;;  %1020 = vmatpush.bf16.msra.mxu3 %v2884_v21  ;;  %v2431_v16 = vld [vmem:[#allocation5 + $0x50] sm:$0xf]  ;;  %v3479_v21 = vld [vmem:[#allocation5 + $0x54] sm:$0xf]  ;;  %v3576_v9 = vld [vmem:[#allocation5 + $0x35c] sm:$0xf] }
  0x5e   :  { %v2689_v24 = vld [vmem:[#allocation5 + $0x270] sm:$0xf0]  ;;  %v2432_v25 = vor.u32 %v3483_v17, %v2431_v16  ;;  %v2655_v30 = vld [vmem:[#allocation5 + $0x210] sm:$0xf]  ;;  %v2825_v10 = vld [vmem:[#allocation5 + $0x378] sm:$0xf0] }
  0x5f   :  { %982 = vmatpush.bf16.msra.mxu0 %v2592_v27  ;;  %1008 = vmatpush.bf16.msra.mxu2 %v2596_v29  ;;  %v3475_v27 = vld [vmem:[#allocation5 + $0x2c] sm:$0xf0]  ;;  %v2436_v29 = vor.u32 %v3479_v21, %v2433_v22  ;;  %v3471_v32 = vld [vmem:[#allocation5 + $0x14] sm:$0xf]  ;;  %v2791_v16 = vld [vmem:[#allocation5 + $0x318] sm:$0xf]  ;;  %v2828_v17 = vor.u32 %v3576_v9, %v2825_v10 }
  0x60   :  { %v3539_v31 = vld [vmem:[#allocation5 + $0x22c] sm:$0xf0]  ;;  %v2401_v34 = vld [vmem:[#allocation5 + $0x30] sm:$0xf0]  ;;  %v3568_v21 = vld [vmem:[#allocation5 + $0x31c] sm:$0xf] }
  0x61   :  { %995 = vmatpush.bf16.msra.mxu1 %v2848_v28  ;;  %1021 = vmatpush.bf16.msra.mxu3 %v2852_v33  ;;  %v2688_v28 = vor.u32 %v3547_v20, %v2687_v18  ;;  %v2692_v33 = vor.u32 %v3543_v23, %v2689_v24  ;;  %v3535_v35 = vld [vmem:[#allocation5 + $0x214] sm:$0xf]  ;;  %v2656_v44 = vor.u32 %v3539_v31, %v2655_v30  ;;  %v3572_v18 = vld [vmem:[#allocation5 + $0x334] sm:$0xf0]  ;;  %v2537_v20 = vld [vmem:[#allocation5 + $0x138] sm:$0xf0] }
  0x62   :  { %v2657_v36 = vld [vmem:[#allocation5 + $0x230] sm:$0xf0]  ;;  %v2793_v22 = vld [vmem:[#allocation5 + $0x338] sm:$0xf0]  ;;  %v2792_v24 = vor.u32 %v3572_v18, %v2791_v16  ;;  %v3564_v30 = vld [vmem:[#allocation5 + $0x2f4] sm:$0xf0] }
  0x63   :  { %983 = vmatpush.bf16.msra.mxu0 %v2560_v39  ;;  %1009 = vmatpush.bf16.msra.mxu2 %v2564_v41  ;;  %v2887_v39 = vld [vmem:[#allocation5 + $0x3d8] sm:$0xf]  ;;  %v2660_v48 = vor.u32 %v3535_v35, %v2657_v36  ;;  %v3496_v31 = vld [vmem:[#allocation5 + $0xdc] sm:$0xf]  ;;  %v3612_v10 = vld [vmem:[#allocation8 + $0x74] sm:$0xf0] }
  0x64   :  { %v3596_v41 = vld [vmem:[#allocation5 + $0x3f4] sm:$0xf0]  ;;  %v2729_v46 = vld [vmem:[#allocation5 + $0x2b8] sm:$0xf0] }
  0x65   :  { %996 = vmatpush.bf16.msra.mxu1 %v2816_v40  ;;  %1022 = vmatpush.bf16.msra.mxu3 %v2820_v45  ;;  %v2400_v40 = vor.u32 %v3475_v27, %v2399_v26  ;;  %v2404_v45 = vor.u32 %v3471_v32, %v2401_v34  ;;  %v2888_v50 = vor.u32 %v3596_v41, %v2887_v39  ;;  %v2503_v26 = vld [vmem:[#allocation5 + $0xd8] sm:$0xf]  ;;  %v2505_v32 = vld [vmem:[#allocation5 + $0xf8] sm:$0xf0] }
  0x66   :  { %v3500_v27 = vld [vmem:[#allocation5 + $0xf4] sm:$0xf0]  ;;  %v2761_v34 = vld [vmem:[#allocation5 + $0x2f8] sm:$0xf0]  ;;  %v2508_v37 = vor.u32 %v3496_v31, %v2505_v32  ;;  %v2927_v31 = vld [vmem:[#allocation8 + $0x40] sm:$0xf] }
  0x67   :  { %984 = vmatpush.bf16.msra.mxu0 %v2528_v51  ;;  %1010 = vmatpush.bf16.msra.mxu2 %v2532_v53  ;;  %v2636_v51 = vor.u32 %v3528_v42, %v2633_v43  ;;  %v3524_v53 = vld [vmem:[#allocation5 + $0x1b4] sm:$0xf0]  ;;  %v2504_v35 = vor.u32 %v3500_v27, %v2503_v26  ;;  %v3488_v43 = vld [vmem:[#allocation5 + $0x9c] sm:$0xf]  ;;  %v3608_v26 = vld [vmem:[#allocation8 + $0x54] sm:$0xf0] }
  0x68   :  { %v2471_v38 = vld [vmem:[#allocation5 + $0x98] sm:$0xf]  ;;  %v2441_v56 = vld [vmem:[#allocation5 + $0x78] sm:$0xf0]  ;;  %v3606_v32 = vld [vmem:[#allocation8 + $0x44] sm:$0xf0] }
  0x69   :  { %997 = vmatpush.bf16.msra.mxu1 %v2784_v52  ;;  %1023 = vmatpush.bf16.msra.mxu3 %v2788_v57  ;;  %v2599_v52 = vld [vmem:[#allocation5 + $0x198] sm:$0xf]  ;;  %v3520_v57 = vld [vmem:[#allocation5 + $0x19c] sm:$0xf] }
  0x6a   :  { %v2600_v61 = vor.u32 %v3524_v53, %v2599_v52  ;;  %v3492_v39 = vld [vmem:[#allocation5 + $0xb4] sm:$0xf0]  ;;  %v2409_v6 = vld [vmem:[#allocation5 + $0x38] sm:$0xf0] }
  0x6b   :  { %985 = vmatpush.bf16.msra.mxu0 %v2496_v63  ;;  %1011 = vmatpush.bf16.msra.mxu2 %v2500_v2  ;;  %v2604_v63 = vor.u32 %v3520_v57, %v2601_v58  ;;  %v3516_v2 = vld [vmem:[#allocation5 + $0x174] sm:$0xf0]  ;;  %v2472_v47 = vor.u32 %v3492_v39, %v2471_v38  ;;  %v3544_v57 = vld [vmem:[#allocation5 + $0x25c] sm:$0xf]  ;;  %v3604_v38 = vld [vmem:[#allocation8 + $0x34] sm:$0xf0] }
  0x6c   :  { %v3556_v42 = vld [vmem:[#allocation5 + $0x2b4] sm:$0xf0]  ;;  %v2697_v58 = vld [vmem:[#allocation5 + $0x278] sm:$0xf0] }
  0x6d   :  { %998 = vmatpush.bf16.msra.mxu1 %v2752_v0  ;;  %1024 = vmatpush.bf16.msra.mxu3 %v2756_v7  ;;  %v2567_v0 = vld [vmem:[#allocation5 + $0x158] sm:$0xf]  ;;  %v3512_v7 = vld [vmem:[#allocation5 + $0x15c] sm:$0xf]  ;;  %v2700_v3 = vor.u32 %v3544_v57, %v2697_v58  ;;  %v2895_v57 = vld [vmem:[#allocation8] sm:$0xf] }
  0x6e   :  { %v2568_v11 = vor.u32 %v3516_v2, %v2567_v0  ;;  %v2695_v52 = vld [vmem:[#allocation5 + $0x258] sm:$0xf]  ;;  %v3598_v58 = vld [vmem:[#allocation8 + $0x4] sm:$0xf0] }
  0x6f   :  { %986 = vmatpush.bf16.msra.mxu0 %v2464_v13  ;;  %1012 = vmatpush.bf16.msra.mxu2 %v2468_v15  ;;  %v2572_v13 = vor.u32 %v3512_v7, %v2569_v8  ;;  %v3508_v15 = vld [vmem:[#allocation5 + $0x134] sm:$0xf0]  ;;  %v3536_v7 = vld [vmem:[#allocation5 + $0x21c] sm:$0xf] }
  0x70   :  { %v3548_v54 = vld [vmem:[#allocation5 + $0x274] sm:$0xf0]  ;;  %v2665_v8 = vld [vmem:[#allocation5 + $0x238] sm:$0xf0] }
  0x71   :  { %999 = vmatpush.bf16.msra.mxu1 %v2720_v14  ;;  %1025 = vmatpush.bf16.msra.mxu3 %v2724_v19  ;;  %v2535_v14 = vld [vmem:[#allocation5 + $0x118] sm:$0xf]  ;;  %v3504_v19 = vld [vmem:[#allocation5 + $0x11c] sm:$0xf]  ;;  %v2668_v16 = vor.u32 %v3536_v7, %v2665_v8  ;;  %v3692_v8 = vld [vmem:[#allocation8 + $0x2f4] sm:$0xf0] }
  0x72   :  { %v2536_v23 = vor.u32 %v3508_v15, %v2535_v14  ;;  %v2407_v60 = vld [vmem:[#allocation5 + $0x18] sm:$0xf] }
  0x73   :  { %987 = vmatpush.bf16.msra.mxu0 %v2432_v25  ;;  %1013 = vmatpush.bf16.msra.mxu2 %v2436_v29  ;;  %v2540_v25 = vor.u32 %v3504_v19, %v2537_v20  ;;  %v2796_v29 = vor.u32 %v3568_v21, %v2793_v22  ;;  %v2663_v0 = vld [vmem:[#allocation5 + $0x218] sm:$0xf]  ;;  %v2943_v19 = vld [vmem:[#allocation8 + $0x60] sm:$0xf]  ;;  %v3610_v20 = vld [vmem:[#allocation8 + $0x64] sm:$0xf0] }
  0x74   :  { %v3540_v2 = vld [vmem:[#allocation5 + $0x234] sm:$0xf0]  ;;  %v3007_v21 = vld [vmem:[#allocation8 + $0xe0] sm:$0xf]  ;;  %v3626_v22 = vld [vmem:[#allocation8 + $0xe4] sm:$0xf0] }
  0x75   :  { %1000 = vmatpush.bf16.msra.mxu1 %v2688_v28  ;;  %1026 = vmatpush.bf16.msra.mxu3 %v2692_v33  ;;  %v2759_v28 = vld [vmem:[#allocation5 + $0x2d8] sm:$0xf]  ;;  %v3560_v33 = vld [vmem:[#allocation5 + $0x2dc] sm:$0xf]  ;;  %v2664_v14 = vor.u32 %v3540_v2, %v2663_v0  ;;  %v3660_v0 = vld [vmem:[#allocation8 + $0x1f4] sm:$0xf0] }
  0x76   :  { %v2760_v36 = vor.u32 %v3564_v30, %v2759_v28  ;;  %v2764_v41 = vor.u32 %v3560_v33, %v2761_v34  ;;  %v2951_v9 = vld [vmem:[#allocation8 + $0x70] sm:$0xf]  ;;  %v3624_v28 = vld [vmem:[#allocation8 + $0xd4] sm:$0xf0]  ;;  %v2991_v33 = vld [vmem:[#allocation8 + $0xc0] sm:$0xf] }
  0x77   :  { %988 = vmatpush.bf16.msra.mxu0 %v2400_v40  ;;  %1014 = vmatpush.bf16.msra.mxu2 %v2404_v45  ;;  %v2727_v40 = vld [vmem:[#allocation5 + $0x298] sm:$0xf]  ;;  %v3552_v45 = vld [vmem:[#allocation5 + $0x29c] sm:$0xf]  ;;  %v3622_v34 = vld [vmem:[#allocation8 + $0xc4] sm:$0xf0] }
  0x78   :  { %v2732_v53 = vor.u32 %v3552_v45, %v2729_v46  ;;  %v2999_v27 = vld [vmem:[#allocation8 + $0xd0] sm:$0xf] }
  0x79   :  { %1001 = vmatpush.bf16.msra.mxu1 %v2656_v44  ;;  %1027 = vmatpush.bf16.msra.mxu3 %v2660_v48  ;;  %v2473_v44 = vld [vmem:[#allocation5 + $0xb8] sm:$0xf0]  ;;  %v2728_v48 = vor.u32 %v3556_v42, %v2727_v40  ;;  %v3000_v30 = vor.u32 %v3624_v28, %v2999_v27  ;;  %v2983_v39 = vld [vmem:[#allocation8 + $0xb0] sm:$0xf]  ;;  %v3602_v42 = vld [vmem:[#allocation8 + $0x24] sm:$0xf0] }
  0x7a   :  { %1015 = vmatmul.bf16.vlgmr.msra.gmra.mxu2 %v3973_v1  ;;  %989 = vmatmul.bf16.vlgmr.msra.gmra.mxu0 %v3973_v1  ;;  %v3207_v2 = vld [vmem:[#allocation8 + $0x270] sm:$0xf]  ;;  %v3672_v28 = vld [vmem:[#allocation8 + $0x254] sm:$0xf0] }
  0x7b   :  { %1033 = vmatpush.bf16.msrb.mxu0 %v2632_v49  ;;  %1059 = vmatpush.bf16.msrb.mxu2 %v2636_v51  ;;  %v2476_v49 = vor.u32 %v3488_v43, %v2473_v44  ;;  %v3484_v51 = vld [vmem:[#allocation5 + $0x74] sm:$0xf0]  ;;  %v2975_v43 = vld [vmem:[#allocation8 + $0xa0] sm:$0xf]  ;;  %v3618_v44 = vld [vmem:[#allocation8 + $0xa4] sm:$0xf0] }
  0x7c   :  { %1028 = vmatmul.bf16.vlgmr.msra.gmra.mxu3 %v3975_v4  ;;  %1002 = vmatmul.bf16.vlgmr.msra.gmra.mxu1 %v3975_v4  ;;  %v2976_v46 = vor.u32 %v3618_v44, %v2975_v43  ;;  %v3191_v27 = vld [vmem:[#allocation8 + $0x250] sm:$0xf]  ;;  %v3183_v44 = vld [vmem:[#allocation8 + $0x240] sm:$0xf] }
  0x7d   :  { %1046 = vmatpush.bf16.msrb.mxu1 %v2888_v50  ;;  %1072 = vmatpush.bf16.msrb.mxu3 %v2892_v55  ;;  %v2439_v50 = vld [vmem:[#allocation5 + $0x58] sm:$0xf]  ;;  %v3480_v55 = vld [vmem:[#allocation5 + $0x5c] sm:$0xf] }
  0x7e   :  { %v2440_v59 = vor.u32 %v3484_v51, %v2439_v50  ;;  %v2967_v50 = vld [vmem:[#allocation8 + $0x90] sm:$0xf] }
  0x7f   :  { %1034 = vmatpush.bf16.msrb.mxu0 %v2600_v61  ;;  %1060 = vmatpush.bf16.msrb.mxu2 %v2604_v63  ;;  %v2696_v61 = vor.u32 %v3548_v54, %v2695_v52  ;;  %v3476_v63 = vld [vmem:[#allocation5 + $0x34] sm:$0xf0]  ;;  %v3616_v52 = vld [vmem:[#allocation8 + $0x94] sm:$0xf0] }
  0x80   :  { %v3644_v54 = vld [vmem:[#allocation8 + $0x174] sm:$0xf0] }
  0x81   :  { %1047 = vmatpush.bf16.msrb.mxu1 %v2856_v62  ;;  %1073 = vmatpush.bf16.msrb.mxu3 %v2860_v5  ;;  %v2444_v62 = vor.u32 %v3480_v55, %v2441_v56  ;;  %v3472_v5 = vld [vmem:[#allocation5 + $0x1c] sm:$0xf]  ;;  %v2968_v55 = vor.u32 %v3616_v52, %v2967_v50  ;;  %v3636_v52 = vld [vmem:[#allocation8 + $0x134] sm:$0xf0] }
  0x82   :  { %v2412_v15 = vor.u32 %v3472_v5, %v2409_v6  ;;  %v3676_v5 = vld [vmem:[#allocation8 + $0x274] sm:$0xf0]  ;;  %v3271_v6 = vld [vmem:[#allocation8 + $0x2f0] sm:$0xf] }
  0x83   :  { %1035 = vmatpush.bf16.msrb.mxu0 %v2568_v11  ;;  %1061 = vmatpush.bf16.msrb.mxu2 %v2572_v13  ;;  %v2408_v11 = vor.u32 %v3476_v63, %v2407_v60  ;;  %v3628_v13 = vld [vmem:[#allocation8 + $0xf4] sm:$0xf0]  ;;  %v3614_v60 = vld [vmem:[#allocation8 + $0x84] sm:$0xf0]  ;;  %v3143_v63 = vld [vmem:[#allocation8 + $0x1f0] sm:$0xf]  ;;  %v3208_v7 = vor.u32 %v3676_v5, %v3207_v2 }
  0x84   :  { %v3684_v5 = vld [vmem:[#allocation8 + $0x2b4] sm:$0xf0] }
  0x85   :  { %1048 = vmatpush.bf16.msrb.mxu1 %v2824_v12  ;;  %1074 = vmatpush.bf16.msrb.mxu3 %v2828_v17  ;;  %v3015_v12 = vld [vmem:[#allocation8 + $0xf0] sm:$0xf]  ;;  %v2952_v17 = vor.u32 %v3612_v10, %v2951_v9  ;;  %v3071_v9 = vld [vmem:[#allocation8 + $0x160] sm:$0xf]  ;;  %v3642_v10 = vld [vmem:[#allocation8 + $0x164] sm:$0xf0] }
  0x86   :  { %v3016_v18 = vor.u32 %v3628_v13, %v3015_v12  ;;  %v3072_v12 = vor.u32 %v3642_v10, %v3071_v9  ;;  %v3135_v13 = vld [vmem:[#allocation8 + $0x1e0] sm:$0xf] }
  0x87   :  { %1036 = vmatpush.bf16.msrb.mxu0 %v2536_v23  ;;  %1062 = vmatpush.bf16.msrb.mxu2 %v2540_v25  ;;  %v2944_v23 = vor.u32 %v3610_v20, %v2943_v19  ;;  %v2935_v25 = vld [vmem:[#allocation8 + $0x50] sm:$0xf]  ;;  %v3690_v19 = vld [vmem:[#allocation8 + $0x2e4] sm:$0xf0] }
  0x89   :  { %1049 = vmatpush.bf16.msrb.mxu1 %v2792_v24  ;;  %1075 = vmatpush.bf16.msrb.mxu3 %v2796_v29  ;;  %v3008_v24 = vor.u32 %v3626_v22, %v3007_v21  ;;  %v2936_v29 = vor.u32 %v3608_v26, %v2935_v25  ;;  %v3063_v22 = vld [vmem:[#allocation8 + $0x150] sm:$0xf]  ;;  %v3656_v26 = vld [vmem:[#allocation8 + $0x1d4] sm:$0xf0] }
  0x8b   :  { %1037 = vmatpush.bf16.msrb.mxu0 %v2504_v35  ;;  %1063 = vmatpush.bf16.msrb.mxu2 %v2508_v37  ;;  %v2928_v35 = vor.u32 %v3606_v32, %v2927_v31  ;;  %v2919_v37 = vld [vmem:[#allocation8 + $0x30] sm:$0xf]  ;;  %v3688_v31 = vld [vmem:[#allocation8 + $0x2d4] sm:$0xf0]  ;;  %v3192_v32 = vor.u32 %v3672_v28, %v3191_v27 }
  0x8c   :  { %v2920_v40 = vor.u32 %v3604_v38, %v2919_v37  ;;  %v3055_v37 = vld [vmem:[#allocation8 + $0x140] sm:$0xf]  ;;  %v3638_v38 = vld [vmem:[#allocation8 + $0x144] sm:$0xf0]  ;;  %v3632_v27 = vld [vmem:[#allocation8 + $0x114] sm:$0xf0] }
  0x8d   :  { %1050 = vmatpush.bf16.msrb.mxu1 %v2760_v36  ;;  %1076 = vmatpush.bf16.msrb.mxu3 %v2764_v41  ;;  %v2992_v36 = vor.u32 %v3622_v34, %v2991_v33  ;;  %v2911_v41 = vld [vmem:[#allocation8 + $0x20] sm:$0xf]  ;;  %v3095_v28 = vld [vmem:[#allocation8 + $0x190] sm:$0xf] }
  0x8e   :  { %v2912_v45 = vor.u32 %v3602_v42, %v2911_v41  ;;  %v3119_v41 = vld [vmem:[#allocation8 + $0x1c0] sm:$0xf]  ;;  %v3654_v42 = vld [vmem:[#allocation8 + $0x1c4] sm:$0xf0] }
  0x8f   :  { %1038 = vmatpush.bf16.msrb.mxu0 %v2472_v47  ;;  %1064 = vmatpush.bf16.msrb.mxu2 %v2476_v49  ;;  %v1089_v47 = vld [vmem:[#allocation7] sm:$0xff]  ;;  %v3120_v43 = vor.u32 %v3654_v42, %v3119_v41  ;;  %v3087_v41 = vld [vmem:[#allocation8 + $0x180] sm:$0xf]  ;;  %v3646_v42 = vld [vmem:[#allocation8 + $0x184] sm:$0xf0] }
  0x90   :  { %1091 = vst [vmem:[#allocation1] ss:$9 sm:$0xff] %v1089_v47  ;;  %v3600_v49 = vld [vmem:[#allocation8 + $0x14] sm:$0xf0]  ;;  %v3247_v47 = vld [vmem:[#allocation8 + $0x2c0] sm:$0xf] }
  0x91   :  { %1051 = vmatpush.bf16.msrb.mxu1 %v2728_v48  ;;  %1077 = vmatpush.bf16.msrb.mxu3 %v2732_v53  ;;  %v2903_v48 = vld [vmem:[#allocation8 + $0x10] sm:$0xf] }
  0x92   :  { %v2904_v51 = vor.u32 %v3600_v49, %v2903_v48  ;;  %v3079_v53 = vld [vmem:[#allocation8 + $0x170] sm:$0xf]  ;;  %v3686_v48 = vld [vmem:[#allocation8 + $0x2c4] sm:$0xf0] }
  0x93   :  { %1039 = vmatpush.bf16.msrb.mxu0 %v2440_v59  ;;  %1065 = vmatpush.bf16.msrb.mxu2 %v2444_v62  ;;  %v3080_v56 = vor.u32 %v3644_v54, %v3079_v53  ;;  %v2959_v59 = vld [vmem:[#allocation8 + $0x80] sm:$0xf]  ;;  %v3248_v50 = vor.u32 %v3686_v48, %v3247_v47 }
  0x94   :  { %v2960_v62 = vor.u32 %v3614_v60, %v2959_v59  ;;  %v3151_v48 = vld [vmem:[#allocation8 + $0x200] sm:$0xf] }
  0x95   :  { %1052 = vmatpush.bf16.msrb.mxu1 %v2696_v61  ;;  %1078 = vmatpush.bf16.msrb.mxu3 %v2700_v3  ;;  %v2896_v61 = vor.u32 %v3598_v58, %v2895_v57  ;;  %v3144_v3 = vor.u32 %v3660_v0, %v3143_v63  ;;  %v3111_v57 = vld [vmem:[#allocation8 + $0x1b0] sm:$0xf]  ;;  %v3652_v58 = vld [vmem:[#allocation8 + $0x1b4] sm:$0xf0] }
  0x96   :  { %v3112_v60 = vor.u32 %v3652_v58, %v3111_v57  ;;  %v3239_v63 = vld [vmem:[#allocation8 + $0x2b0] sm:$0xf]  ;;  %v3708_v57 = vld [vmem:[#allocation8 + $0x374] sm:$0xf0] }
  0x97   :  { %1040 = vmatpush.bf16.msrb.mxu0 %v2408_v11  ;;  %1066 = vmatpush.bf16.msrb.mxu2 %v2412_v15  ;;  %v3272_v11 = vor.u32 %v3692_v8, %v3271_v6  ;;  %v3199_v15 = vld [vmem:[#allocation8 + $0x260] sm:$0xf]  ;;  %v1092_v34 = vld [vmem:[#allocation1] sm:$0xff]  ;;  %v3240_v9 = vor.u32 %v3684_v5, %v3239_v63  ;;  %v3399_v58 = vld [vmem:[#allocation8 + $0x3f0] sm:$0xf] }
  0x98   :  { %v3039_v6 = vld [vmem:[#allocation8 + $0x120] sm:$0xf]  ;;  %v3627_v5 = vld [vmem:[#allocation8 + $0xf4] sm:$0xf] }
  0x99   :  { %1053 = vmatpush.bf16.msrb.mxu1 %v2664_v14  ;;  %1079 = vmatpush.bf16.msrb.mxu3 %v2668_v16  ;;  %v3658_v14 = vld [vmem:[#allocation8 + $0x1e4] sm:$0xf0] }
  0x9a   :  { %1041 = vmatmul.bf16.vlgmr.msrb.gmra.mxu0 %v3973_v1  ;;  %1067 = vmatmul.bf16.vlgmr.msrb.gmra.mxu2 %v3973_v1  ;;  %v3620_v1 = vld [vmem:[#allocation8 + $0xb4] sm:$0xf0]  ;;  %v3136_v16 = vor.u32 %v3658_v14, %v3135_v13  ;;  %v3103_v14 = vld [vmem:[#allocation8 + $0x1a0] sm:$0xf] }
  0x9b   :  { %1964 = vmatpush.bf16.msra.mxu0 %v2952_v17  ;;  %1990 = vmatpush.bf16.msra.mxu2 %v3080_v56  ;;  %v3674_v17 = vld [vmem:[#allocation8 + $0x264] sm:$0xf0] }
  0x9c   :  { %1054 = vmatmul.bf16.vlgmr.msrb.gmra.mxu1 %v3975_v4  ;;  %1080 = vmatmul.bf16.vlgmr.msrb.gmra.mxu3 %v3975_v4  ;;  %v2984_v4 = vor.u32 %v3620_v1, %v2983_v39  ;;  %v3200_v20 = vor.u32 %v3674_v17, %v3199_v15  ;;  %v3056_v1 = vor.u32 %v3638_v38, %v3055_v37  ;;  %v3650_v15 = vld [vmem:[#allocation8 + $0x1a4] sm:$0xf0]  ;;  %v3680_v37 = vld [vmem:[#allocation8 + $0x294] sm:$0xf0]  ;;  %v3023_v38 = vld [vmem:[#allocation8 + $0x100] sm:$0xf] }
  0x9d   :  { %1977 = vmatpush.bf16.msra.mxu1 %v3016_v18  ;;  %2003 = vmatpush.bf16.msra.mxu3 %v3144_v3  ;;  %v3263_v18 = vld [vmem:[#allocation8 + $0x2e0] sm:$0xf]  ;;  %v3104_v17 = vor.u32 %v3650_v15, %v3103_v14  ;;  %v3722_v15 = vld [vmem:[#allocation8 + $0x3e4] sm:$0xf0] }
  0x9e   :  { %v3264_v21 = vor.u32 %v3690_v19, %v3263_v18  ;;  %v3666_v18 = vld [vmem:[#allocation8 + $0x224] sm:$0xf0]  ;;  %v3231_v19 = vld [vmem:[#allocation8 + $0x2a0] sm:$0xf] }
  0x9f   :  { %1965 = vmatpush.bf16.msra.mxu0 %v2944_v23  ;;  %1991 = vmatpush.bf16.msra.mxu2 %v3072_v12  ;;  %v3640_v23 = vld [vmem:[#allocation8 + $0x154] sm:$0xf0]  ;;  %v3391_v14 = vld [vmem:[#allocation8 + $0x3e0] sm:$0xf] }
  0xa0   :  { %v3064_v25 = vor.u32 %v3640_v23, %v3063_v22 }
  0xa1   :  { %1978 = vmatpush.bf16.msra.mxu1 %v3008_v24  ;;  %v3127_v24 = vld [vmem:[#allocation8 + $0x1d0] sm:$0xf]  ;;  %2004 = vmatpush.bf16.msra.mxu3 %v3136_v16  ;;  %v3167_v16 = vld [vmem:[#allocation8 + $0x220] sm:$0xf] }
  0xa3   :  { %1966 = vmatpush.bf16.msra.mxu0 %v2936_v29  ;;  %v3128_v29 = vor.u32 %v3656_v26, %v3127_v24  ;;  %1992 = vmatpush.bf16.msra.mxu2 %v3064_v25  ;;  %v3168_v24 = vor.u32 %v3666_v18, %v3167_v16  ;;  %v3031_v26 = vld [vmem:[#allocation8 + $0x110] sm:$0xf]  ;;  %v3609_v16 = vld [vmem:[#allocation8 + $0x64] sm:$0xf]  ;;  %v3392_v18 = vor.u32 %v3722_v15, %v3391_v14 }
  0xa5   :  { %1979 = vmatpush.bf16.msra.mxu1 %v3000_v30  ;;  %v3255_v30 = vld [vmem:[#allocation8 + $0x2d0] sm:$0xf]  ;;  %2005 = vmatpush.bf16.msra.mxu3 %v3128_v29  ;;  %v3032_v29 = vor.u32 %v3632_v27, %v3031_v26 }
  0xa6   :  { %v3256_v33 = vor.u32 %v3688_v31, %v3255_v30  ;;  %v3648_v30 = vld [vmem:[#allocation8 + $0x194] sm:$0xf0]  ;;  %v3159_v31 = vld [vmem:[#allocation8 + $0x210] sm:$0xf] }
  0xa7   :  { %1967 = vmatpush.bf16.msra.mxu0 %v2928_v35  ;;  %v1093_v35 = vld [vmem:[#allocation1 + $0x9] sm:$0xff]  ;;  %1993 = vmatpush.bf16.msra.mxu2 %v3056_v1 }
  0xa9   :  { %1980 = vmatpush.bf16.msra.mxu1 %v2992_v36  ;;  %2006 = vmatpush.bf16.msra.mxu3 %v3120_v43 }
  0xab   :  { %1968 = vmatpush.bf16.msra.mxu0 %v2920_v40  ;;  %v1100_v40 = vpack.i.b16 %v1092_v34, %v1092_v34 }
  0xad   :  { %1981 = vmatpush.bf16.msra.mxu1 %v2984_v4  ;;  %v1103_v4 = vpack.i.b16 %v1093_v35, %v1093_v35  ;;  %v1102_v54 = vperm.slane %v1100_v40, 0  ;;  %2007 = vmatpush.bf16.msra.mxu3 %v3112_v60  ;;  %v3096_v35 = vor.u32 %v3648_v30, %v3095_v28  ;;  %v1094_v60 = vld [vmem:[#allocation1 + $0x12] sm:$0xff]  ;;  %v3607_v30 = vld [vmem:[#allocation8 + $0x54] sm:$0xf] }
  0xae   :  { %v1106_v26 = vpack.i.b16 %v1094_v60, %v1094_v60 }
  0xaf   :  { %1969 = vmatpush.bf16.msra.mxu0 %v2912_v45  ;;  %v1132_v12 = vunpack.c.l.bf16 %v1102_v54  ;;  %v3678_v54 = vld [vmem:[#allocation8 + $0x284] sm:$0xf0] }
  0xb1   :  { %1982 = vmatpush.bf16.msra.mxu1 %v2976_v46  ;;  %v3670_v46 = vld [vmem:[#allocation8 + $0x244] sm:$0xf0]  ;;  %2008 = vmatpush.bf16.msra.mxu3 %v3104_v17 }
  0xb2   :  { %v3184_v49 = vor.u32 %v3670_v46, %v3183_v44 }
  0xb3   :  { %1970 = vmatpush.bf16.msra.mxu0 %v2904_v51  ;;  %v3047_v51 = vld [vmem:[#allocation8 + $0x130] sm:$0xf] }
  0xb4   :  { %v3048_v56 = vor.u32 %v3636_v52, %v3047_v51 }
  0xb5   :  { %1983 = vmatpush.bf16.msra.mxu1 %v2968_v55  ;;  %v1105_v55 = vperm.slane %v1103_v4, 0  ;;  %v3630_v4 = vld [vmem:[#allocation8 + $0x104] sm:$0xf0]  ;;  %2009 = vmatpush.bf16.msra.mxu3 %v3096_v35  ;;  %v2937_v35 = vld [vmem:[#allocation8 + $0x58] sm:$0xf0] }
  0xb6   :  { %1994 = vmatpush.bf16.msra.mxu2 %v3048_v56  ;;  %v3024_v44 = vor.u32 %v3630_v4, %v3023_v38  ;;  %v2940_v38 = vor.u32 %v3607_v30, %v2937_v35  ;;  %v1108_v4 = vperm.slane %v1106_v26, 0  ;;  %v3287_v30 = vld [vmem:[#allocation8 + $0x310] sm:$0xf]  ;;  %v3712_v35 = vld [vmem:[#allocation8 + $0x394] sm:$0xf0] }
  0xb7   :  { %1971 = vmatpush.bf16.msra.mxu0 %v2896_v61  ;;  %v886_v36 = vpop.f32.mrf.mxu0  ;;  %v3175_v61 = vld [vmem:[#allocation8 + $0x230] sm:$0xf]  ;;  %v1133_v13 = vunpack.c.l.bf16 %v1105_v55 }
  0xb8   :  { %v3335_v55 = vld [vmem:[#allocation8 + $0x370] sm:$0xf] }
  0xb9   :  { %1984 = vmatpush.bf16.msra.mxu1 %v2960_v62  ;;  %v899_v39 = vpop.f32.mrf.mxu1  ;;  %v3668_v62 = vld [vmem:[#allocation8 + $0x234] sm:$0xf0]  ;;  %v3336_v63 = vor.u32 %v3708_v57, %v3335_v55  ;;  %v2993_v55 = vld [vmem:[#allocation8 + $0xc8] sm:$0xf0]  ;;  %v1134_v57 = vunpack.c.l.bf16 %v1108_v4  ;;  %v3615_v4 = vld [vmem:[#allocation8 + $0x94] sm:$0xf] }
  0xba   :  { %v900_v53 = vadd.f32 %v899_v39, %v886_v36  ;;  %v3176_v3 = vor.u32 %v3668_v62, %v3175_v61  ;;  %v3223_v36 = vld [vmem:[#allocation8 + $0x290] sm:$0xf] }
  0xbb   :  { %2016 = vmatpush.bf16.msrb.mxu0 %v3208_v7  ;;  %v3634_v7 = vld [vmem:[#allocation8 + $0x124] sm:$0xf0]  ;;  %v3224_v40 = vor.u32 %v3680_v37, %v3223_v36  ;;  %v3623_v36 = vld [vmem:[#allocation8 + $0xd4] sm:$0xf]  ;;  %v3001_v37 = vld [vmem:[#allocation8 + $0xd8] sm:$0xf0] }
  0xbc   :  { %v3040_v10 = vor.u32 %v3634_v7, %v3039_v6  ;;  %v1095_v6 = vld [vmem:[#allocation1 + $0x1b] sm:$0xff] }
  0xbd   :  { %2029 = vmatpush.bf16.msrb.mxu1 %v3272_v11  ;;  %v912_v45 = vpop.f32.mrf.mxu2 }
  0xbe   :  { %1995 = vmatpush.bf16.msra.mxu2 %v3040_v10  ;;  %v3706_v10 = vld [vmem:[#allocation8 + $0x364] sm:$0xf0] }
  0xbf   :  { %2017 = vmatpush.bf16.msrb.mxu0 %v3200_v20  ;;  %v925_v59 = vpop.f32.mrf.mxu3  ;;  %v888_v2 = vpop.f32.mrf.mxu0  ;;  %v3682_v20 = vld [vmem:[#allocation8 + $0x2a4] sm:$0xf0] }
  0xc0   :  { %v926_v0 = vadd.f32 %v925_v59, %v912_v45  ;;  %v3232_v25 = vor.u32 %v3682_v20, %v3231_v19  ;;  %v3088_v45 = vor.u32 %v3646_v42, %v3087_v41  ;;  %v3724_v59 = vld [vmem:[#allocation8 + $0x3f4] sm:$0xf0]  ;;  %v3611_v2 = vld [vmem:[#allocation8 + $0x74] sm:$0xf]  ;;  %v2945_v19 = vld [vmem:[#allocation8 + $0x68] sm:$0xf0] }
  0xc1   :  { %2030 = vmatpush.bf16.msrb.mxu1 %v3264_v21  ;;  %v901_v8 = vpop.f32.mrf.mxu1  ;;  %v3625_v20 = vld [vmem:[#allocation8 + $0xe4] sm:$0xf]  ;;  %v2948_v27 = vor.u32 %v3609_v16, %v2945_v19  ;;  %v3311_v42 = vld [vmem:[#allocation8 + $0x340] sm:$0xf]  ;;  %v3698_v19 = vld [vmem:[#allocation8 + $0x324] sm:$0xf0] }
  0xc2   :  { %v1085_v11 = vpack.c.bf16 %v926_v0, %v900_v53  ;;  %1996 = vmatpush.bf16.msra.mxu2 %v3032_v29  ;;  %2010 = vmatpush.bf16.msra.mxu3 %v3088_v45  ;;  %v3400_v0 = vor.u32 %v3724_v59, %v3399_v58  ;;  %v3017_v8 = vld [vmem:[#allocation8 + $0xf8] sm:$0xf0]  ;;  %v3720_v29 = vld [vmem:[#allocation8 + $0x3d4] sm:$0xf0]  ;;  %v3375_v45 = vld [vmem:[#allocation8 + $0x3c0] sm:$0xf] }
  0xc3   :  { %2018 = vmatpush.bf16.msrb.mxu0 %v3192_v32  ;;  %v3664_v32 = vld [vmem:[#allocation8 + $0x214] sm:$0xf0] }
  0xc4   :  { %v1124_v21 = vunpack.c.l.bf16 %v1085_v11  ;;  %v1125_v22 = vunpack.c.h.bf16 %v1085_v11  ;;  %v3160_v1 = vor.u32 %v3664_v32, %v3159_v31  ;;  %v1109_v32 = vpack.i.b16 %v1095_v6, %v1095_v6 }
  0xc5   :  { %2031 = vmatpush.bf16.msrb.mxu1 %v3256_v33  ;;  %v914_v23 = vpop.f32.mrf.mxu2 }
  0xc6   :  { %v1140_v33 = vadd.f32 %v1132_v12, %v1124_v21  ;;  %v1141_v34 = vadd.f32 %v1133_v13, %v1125_v22  ;;  %1997 = vmatpush.bf16.msra.mxu2 %v3024_v44  ;;  %2055 = vmatpush.bf16.msrb.mxu3 %v3400_v0  ;;  %v3020_v13 = vor.u32 %v3627_v5, %v3017_v8  ;;  %v3009_v21 = vld [vmem:[#allocation8 + $0xe8] sm:$0xf0]  ;;  %v3319_v22 = vld [vmem:[#allocation8 + $0x350] sm:$0xf]  ;;  %v3704_v23 = vld [vmem:[#allocation8 + $0x354] sm:$0xf0] }
  0xc7   :  { %2019 = vmatpush.bf16.msrb.mxu0 %v3184_v49  ;;  %v927_v39 = vpop.f32.mrf.mxu3  ;;  %v3662_v49 = vld [vmem:[#allocation8 + $0x204] sm:$0xf0]  ;;  %v3012_v28 = vor.u32 %v3625_v20, %v3009_v21  ;;  %v1111_v41 = vperm.slane %v1109_v32, 0  ;;  %v2921_v5 = vld [vmem:[#allocation8 + $0x38] sm:$0xf0] }
  0xc8   :  { %v1148_v43 = vpack.c.bf16 %v1141_v34, %v1140_v33  ;;  %v3152_v53 = vor.u32 %v3662_v49, %v3151_v48  ;;  %v3320_v33 = vor.u32 %v3704_v23, %v3319_v22  ;;  %v3004_v39 = vor.u32 %v3623_v36, %v3001_v37  ;;  %v3702_v44 = vld [vmem:[#allocation8 + $0x344] sm:$0xf0]  ;;  %v3359_v20 = vld [vmem:[#allocation8 + $0x3a0] sm:$0xf] }
  0xc9   :  { %2032 = vmatpush.bf16.msrb.mxu1 %v3248_v50  ;;  %v3215_v50 = vld [vmem:[#allocation8 + $0x280] sm:$0xf]  ;;  %v3312_v48 = vor.u32 %v3702_v44, %v3311_v42  ;;  %v1135_v58 = vunpack.c.l.bf16 %v1111_v41  ;;  %v3714_v23 = vld [vmem:[#allocation8 + $0x3a4] sm:$0xf0]  ;;  %v2969_v41 = vld [vmem:[#allocation8 + $0x98] sm:$0xf0] }
  0xca   :  { %v1152_v46 = vunpack.c.l.bf16 %v1148_v43  ;;  %v1153_v47 = vunpack.c.h.bf16 %v1148_v43  ;;  %v3216_v56 = vor.u32 %v3678_v54, %v3215_v50  ;;  %2042 = vmatpush.bf16.msrb.mxu2 %v3336_v63  ;;  %2056 = vmatpush.bf16.msrb.mxu3 %v3392_v18  ;;  %v3605_v50 = vld [vmem:[#allocation8 + $0x44] sm:$0xf]  ;;  %v3367_v63 = vld [vmem:[#allocation8 + $0x3b0] sm:$0xf]  ;;  %v3295_v18 = vld [vmem:[#allocation8 + $0x320] sm:$0xf] }
  0xcb   :  { %2020 = vmatpush.bf16.msrb.mxu0 %v3176_v3  ;;  %v2953_v3 = vld [vmem:[#allocation8 + $0x78] sm:$0xf0]  ;;  %v3296_v22 = vor.u32 %v3698_v19, %v3295_v18  ;;  %v3655_v18 = vld [vmem:[#allocation8 + $0x1d4] sm:$0xf] }
  0xcc   :  { %v1160_v51 = vmul.f32 0.18164063, %v1152_v46  ;;  %v1161_v52 = vmul.f32 0.18164063, %v1153_v47  ;;  %v2956_v7 = vor.u32 %v3611_v2, %v2953_v3  ;;  %v3716_v2 = vld [vmem:[#allocation8 + $0x3b4] sm:$0xf0]  ;;  %v3603_v3 = vld [vmem:[#allocation8 + $0x34] sm:$0xf] }
  0xcd   :  { %2033 = vmatpush.bf16.msrb.mxu1 %v3240_v9  ;;  %v3327_v9 = vld [vmem:[#allocation8 + $0x360] sm:$0xf]  ;;  %v3368_v8 = vor.u32 %v3716_v2, %v3367_v63  ;;  %v3081_v63 = vld [vmem:[#allocation8 + $0x178] sm:$0xf0] }
  0xce   :  { %v1180_v61 = vmax.f32 %v1152_v46, %v1160_v51  ;;  %v1181_v62 = vmax.f32 %v1153_v47, %v1161_v52  ;;  %v3328_v17 = vor.u32 %v3706_v10, %v3327_v9  ;;  %v3718_v46 = vld [vmem:[#allocation8 + $0x3c4] sm:$0xf0]  ;;  %v2929_v51 = vld [vmem:[#allocation8 + $0x48] sm:$0xf0]  ;;  %v3621_v52 = vld [vmem:[#allocation8 + $0xc4] sm:$0xf] }
  0xcf   :  { %2021 = vmatpush.bf16.msrb.mxu0 %v3168_v24  ;;  %v3383_v24 = vld [vmem:[#allocation8 + $0x3d0] sm:$0xf]  ;;  %v3376_v49 = vor.u32 %v3718_v46, %v3375_v45  ;;  %v2932_v54 = vor.u32 %v3605_v50, %v2929_v51  ;;  %v2996_v60 = vor.u32 %v3621_v52, %v2993_v55  ;;  %v3619_v9 = vld [vmem:[#allocation8 + $0xb4] sm:$0xf]  ;;  %v2985_v10 = vld [vmem:[#allocation8 + $0xb8] sm:$0xf0]  ;;  %v2972_v45 = vor.u32 %v3615_v4, %v2969_v41 }
  0xd0   :  { %v3993_v11 = vpack.c.bf16 %v1180_v61, %v1180_v61  ;;  %v3995_v12 = vpack.c.bf16 %v1181_v62, %v1181_v62  ;;  %2043 = vmatpush.bf16.msrb.mxu2 %v3328_v17  ;;  %v3384_v34 = vor.u32 %v3720_v29, %v3383_v24  ;;  %v3303_v61 = vld [vmem:[#allocation8 + $0x330] sm:$0xf]  ;;  %v3700_v62 = vld [vmem:[#allocation8 + $0x334] sm:$0xf0]  ;;  %v2988_v14 = vor.u32 %v3619_v9, %v2985_v10  ;;  %v3601_v24 = vld [vmem:[#allocation8 + $0x24] sm:$0xf] }
  0xd1   :  { %2034 = vmatpush.bf16.msrb.mxu1 %v3232_v25  ;;  %v3304_v0 = vor.u32 %v3700_v62, %v3303_v61  ;;  %v2977_v29 = vld [vmem:[#allocation8 + $0xa8] sm:$0xf0]  ;;  %v3343_v50 = vld [vmem:[#allocation8 + $0x380] sm:$0xf]  ;;  %v3710_v52 = vld [vmem:[#allocation8 + $0x384] sm:$0xf0] }
  0xd2   :  { %1972 = vmatmul.bf16.vlgmr.msra.gmra.mxu0 %v3993_v11  ;;  %1985 = vmatmul.bf16.vlgmr.msra.gmra.mxu1 %v3995_v12  ;;  %v3145_v2 = vld [vmem:[#allocation8 + $0x1f8] sm:$0xf0] }
  0xd3   :  { %2022 = vmatpush.bf16.msrb.mxu0 %v3160_v1  ;;  %2057 = vmatpush.bf16.msrb.mxu3 %v3384_v34  ;;  %v3351_v34 = vld [vmem:[#allocation8 + $0x390] sm:$0xf]  ;;  %v1097_v9 = vld [vmem:[#allocation1 + $0x2d] sm:$0xff] }
  0xd4   :  { %2044 = vmatpush.bf16.msrb.mxu2 %v3320_v33  ;;  %v3696_v33 = vld [vmem:[#allocation8 + $0x314] sm:$0xf0] }
  0xd5   :  { %2035 = vmatpush.bf16.msrb.mxu1 %v3224_v40 }
  0xd7   :  { %2023 = vmatpush.bf16.msrb.mxu0 %v3152_v53  ;;  %v938_v25 = vpop.f32.mrf.mxu0  ;;  %2058 = vmatpush.bf16.msrb.mxu3 %v3376_v49  ;;  %v3694_v49 = vld [vmem:[#allocation8 + $0x304] sm:$0xf0] }
  0xd8   :  { %2045 = vmatpush.bf16.msrb.mxu2 %v3312_v48  ;;  %v3279_v48 = vld [vmem:[#allocation8 + $0x300] sm:$0xf] }
  0xd9   :  { %2036 = vmatpush.bf16.msrb.mxu1 %v3216_v56  ;;  %v951_v31 = vpop.f32.mrf.mxu1  ;;  %v3280_v51 = vor.u32 %v3694_v49, %v3279_v48  ;;  %v4005_v49 = vld [vmem:[#allocation1 + $0x36] sm:$0xff] }
  0xda   :  { %v952_v1 = vadd.f32 %v951_v31, %v938_v25  ;;  %v2913_v25 = vld [vmem:[#allocation8 + $0x28] sm:$0xf0] }
  0xdb   :  { %2068 = vmatpush.bf16.msra.mxu0 %v2956_v7  ;;  %2059 = vmatpush.bf16.msrb.mxu3 %v3368_v8  ;;  %v2916_v31 = vor.u32 %v3601_v24, %v2913_v25  ;;  %v3073_v8 = vld [vmem:[#allocation8 + $0x168] sm:$0xf0] }
  0xdc   :  { %2046 = vmatpush.bf16.msrb.mxu2 %v3304_v0  ;;  %v3659_v0 = vld [vmem:[#allocation8 + $0x1f4] sm:$0xf] }
  0xdd   :  { %2081 = vmatpush.bf16.msra.mxu1 %v3020_v13  ;;  %v964_v40 = vpop.f32.mrf.mxu2  ;;  %v2924_v13 = vor.u32 %v3603_v3, %v2921_v5  ;;  %v3148_v5 = vor.u32 %v3659_v0, %v3145_v2  ;;  %v3631_v2 = vld [vmem:[#allocation8 + $0x114] sm:$0xf] }
  0xdf   :  { %2069 = vmatpush.bf16.msra.mxu0 %v2948_v27  ;;  %v977_v43 = vpop.f32.mrf.mxu3  ;;  %v940_v53 = vpop.f32.mrf.mxu0  ;;  %v3360_v27 = vor.u32 %v3714_v23, %v3359_v20 }
  0xe0   :  { %v978_v47 = vadd.f32 %v977_v43, %v964_v40  ;;  %2047 = vmatpush.bf16.msrb.mxu2 %v3296_v22  ;;  %v2905_v40 = vld [vmem:[#allocation8 + $0x18] sm:$0xf0]  ;;  %v3597_v53 = vld [vmem:[#allocation8 + $0x4] sm:$0xf] }
  0xe1   :  { %2082 = vmatpush.bf16.msra.mxu1 %v3012_v28  ;;  %v953_v59 = vpop.f32.mrf.mxu1  ;;  %v3617_v28 = vld [vmem:[#allocation8 + $0xa4] sm:$0xf]  ;;  %2060 = vmatpush.bf16.msrb.mxu3 %v3360_v27  ;;  %v3129_v22 = vld [vmem:[#allocation8 + $0x1d8] sm:$0xf0] }
  0xe2   :  { %v1086_v56 = vpack.c.bf16 %v978_v47, %v952_v1  ;;  %v2980_v32 = vor.u32 %v3617_v28, %v2977_v29  ;;  %v3599_v1 = vld [vmem:[#allocation8 + $0x14] sm:$0xf]  ;;  %v2961_v59 = vld [vmem:[#allocation8 + $0x88] sm:$0xf0]  ;;  %v3132_v25 = vor.u32 %v3655_v18, %v3129_v22  ;;  %v3637_v28 = vld [vmem:[#allocation8 + $0x144] sm:$0xf] }
  0xe3   :  { %2070 = vmatpush.bf16.msra.mxu0 %v2940_v38  ;;  %v3288_v38 = vor.u32 %v3696_v33, %v3287_v30  ;;  %v2908_v44 = vor.u32 %v3599_v1, %v2905_v40  ;;  %v3121_v33 = vld [vmem:[#allocation8 + $0x1c8] sm:$0xf0]  ;;  %v3049_v1 = vld [vmem:[#allocation8 + $0x138] sm:$0xf0]  ;;  %v3651_v40 = vld [vmem:[#allocation8 + $0x1b4] sm:$0xf] }
  0xe4   :  { %v1126_v6 = vunpack.c.l.bf16 %v1086_v56  ;;  %v1127_v7 = vunpack.c.h.bf16 %v1086_v56  ;;  %v3273_v18 = vld [vmem:[#allocation8 + $0x2f8] sm:$0xf0] }
  0xe5   :  { %2083 = vmatpush.bf16.msra.mxu1 %v3004_v39  ;;  %v966_v17 = vpop.f32.mrf.mxu2  ;;  %v3352_v39 = vor.u32 %v3712_v35, %v3351_v34  ;;  %2048 = vmatpush.bf16.msrb.mxu2 %v3288_v38 }
  0xe6   :  { %v1142_v15 = vadd.f32 %v1134_v57, %v1126_v6  ;;  %v1143_v16 = vadd.f32 %v1135_v58, %v1127_v7  ;;  %v3344_v57 = vor.u32 %v3710_v52, %v3343_v50  ;;  %v3613_v58 = vld [vmem:[#allocation8 + $0x84] sm:$0xf]  ;;  %v1096_v6 = vld [vmem:[#allocation1 + $0x24] sm:$0xff]  ;;  %v3065_v17 = vld [vmem:[#allocation8 + $0x158] sm:$0xf0] }
  0xe7   :  { %2071 = vmatpush.bf16.msra.mxu0 %v2932_v54  ;;  %v979_v21 = vpop.f32.mrf.mxu3  ;;  %2061 = vmatpush.bf16.msrb.mxu3 %v3352_v39  ;;  %v2897_v54 = vld [vmem:[#allocation8 + $0x8] sm:$0xf0]  ;;  %v2964_v62 = vor.u32 %v3613_v58, %v2961_v59  ;;  %v3641_v7 = vld [vmem:[#allocation8 + $0x164] sm:$0xf]  ;;  %v1112_v20 = vpack.i.b16 %v1096_v6, %v1096_v6  ;;  %v3635_v39 = vld [vmem:[#allocation8 + $0x134] sm:$0xf] }
  0xe8   :  { %v1149_v26 = vpack.c.bf16 %v1143_v16, %v1142_v15  ;;  %v2900_v61 = vor.u32 %v3597_v53, %v2897_v54  ;;  %v3076_v10 = vor.u32 %v3641_v7, %v3073_v8  ;;  %v3639_v16 = vld [vmem:[#allocation8 + $0x154] sm:$0xf]  ;;  %v1115_v21 = vpack.i.b16 %v1097_v9, %v1097_v9  ;;  %v3633_v50 = vld [vmem:[#allocation8 + $0x124] sm:$0xf]  ;;  %v2173_v59 = vld [vmem:[%s4046_s4] sm:$0x3] }
  0xe9   :  { %2084 = vmatpush.bf16.msra.mxu1 %v2996_v60  ;;  %v3643_v60 = vld [vmem:[#allocation8 + $0x174] sm:$0xf]  ;;  %2049 = vmatpush.bf16.msrb.mxu2 %v3280_v51  ;;  %v3068_v24 = vor.u32 %v3639_v16, %v3065_v17  ;;  %v3041_v51 = vld [vmem:[#allocation8 + $0x128] sm:$0xf0]  ;;  %v3649_v52 = vld [vmem:[#allocation8 + $0x1a4] sm:$0xf] }
  0xea   :  { %v1154_v36 = vunpack.c.l.bf16 %v1149_v26  ;;  %v1155_v37 = vunpack.c.h.bf16 %v1149_v26  ;;  %v3084_v3 = vor.u32 %v3643_v60, %v3081_v63  ;;  %v1114_v26 = vperm.slane %v1112_v20, 0  ;;  %v4007_v58 = vld [vmem:[#allocation1 + $0x3f] sm:$0xff]  ;;  %v3097_v6 = vld [vmem:[#allocation8 + $0x198] sm:$0xf0]  ;;  %v3691_v17 = vld [vmem:[#allocation8 + $0x2f4] sm:$0xf] }
  0xeb   :  { %2072 = vmatpush.bf16.msra.mxu0 %v2924_v13  ;;  %2062 = vmatpush.bf16.msrb.mxu3 %v3344_v57  ;;  %v3657_v13 = vld [vmem:[#allocation8 + $0x1e4] sm:$0xf]  ;;  %v1117_v27 = vperm.slane %v1115_v21, 0  ;;  %v3044_v60 = vor.u32 %v3633_v50, %v3041_v51  ;;  %2175 = vst [vmem:[#allocation1] ss:$9 sm:$0xff] %v2173_v59 }
  0xec   :  { %v1162_v42 = vmul.f32 0.18164063, %v1154_v36  ;;  %v1163_v43 = vmul.f32 0.18164063, %v1155_v37  ;;  %v1136_v41 = vunpack.c.l.bf16 %v1114_v26  ;;  %v3025_v20 = vld [vmem:[#allocation8 + $0x108] sm:$0xf0]  ;;  %v3645_v21 = vld [vmem:[#allocation8 + $0x184] sm:$0xf]  ;;  %v3276_v26 = vor.u32 %v3691_v17, %v3273_v18 }
  0xed   :  { %2085 = vmatpush.bf16.msra.mxu1 %v2988_v14  ;;  %v3137_v14 = vld [vmem:[#allocation8 + $0x1e8] sm:$0xf0]  ;;  %v3663_v18 = vld [vmem:[#allocation8 + $0x214] sm:$0xf] }
  0xee   :  { %v1182_v46 = vmax.f32 %v1154_v36, %v1162_v42  ;;  %v1183_v47 = vmax.f32 %v1155_v37, %v1163_v43  ;;  %v3140_v15 = vor.u32 %v3657_v13, %v3137_v14  ;;  %v1137_v42 = vunpack.c.l.bf16 %v1117_v27  ;;  %v3675_v13 = vld [vmem:[#allocation8 + $0x274] sm:$0xf]  ;;  %v3209_v14 = vld [vmem:[#allocation8 + $0x278] sm:$0xf0]  ;;  %v3673_v27 = vld [vmem:[#allocation8 + $0x264] sm:$0xf] }
  0xef   :  { %2073 = vmatpush.bf16.msra.mxu0 %v2916_v31  ;;  %v3057_v31 = vld [vmem:[#allocation8 + $0x148] sm:$0xf0] }
  0xf0   :  { %v3999_v55 = vpack.c.bf16 %v1182_v46, %v1182_v46  ;;  %v4001_v56 = vpack.c.bf16 %v1183_v47, %v1183_v47  ;;  %v3060_v35 = vor.u32 %v3637_v28, %v3057_v31  ;;  %v3689_v31 = vld [vmem:[#allocation8 + $0x2e4] sm:$0xf] }
  0xf1   :  { %2086 = vmatpush.bf16.msra.mxu1 %v2980_v32  ;;  %v3653_v32 = vld [vmem:[#allocation8 + $0x1c4] sm:$0xf] }
  0xf2   :  { %1998 = vmatmul.bf16.vlgmr.msra.gmra.mxu2 %v3999_v55  ;;  %2011 = vmatmul.bf16.vlgmr.msra.gmra.mxu3 %v4001_v56  ;;  %v3124_v36 = vor.u32 %v3653_v32, %v3121_v33  ;;  %v3265_v32 = vld [vmem:[#allocation8 + $0x2e8] sm:$0xf0] }
  0xf3   :  { %2074 = vmatpush.bf16.msra.mxu0 %v2908_v44  ;;  %2094 = vmatpush.bf16.msra.mxu2 %v3084_v3  ;;  %v3052_v44 = vor.u32 %v3635_v39, %v3049_v1  ;;  %v3033_v3 = vld [vmem:[#allocation8 + $0x118] sm:$0xf0]  ;;  %v3687_v39 = vld [vmem:[#allocation8 + $0x2d4] sm:$0xf] }
  0xf4   :  { %2107 = vmatpush.bf16.msra.mxu3 %v3148_v5  ;;  %v3647_v5 = vld [vmem:[#allocation8 + $0x194] sm:$0xf]  ;;  %v3036_v9 = vor.u32 %v3631_v2, %v3033_v3  ;;  %v3257_v1 = vld [vmem:[#allocation8 + $0x2d8] sm:$0xf0] }
  0xf5   :  { %2087 = vmatpush.bf16.msra.mxu1 %v2972_v45  ;;  %v3113_v45 = vld [vmem:[#allocation8 + $0x1b8] sm:$0xf0] }
  0xf6   :  { %v3116_v46 = vor.u32 %v3651_v40, %v3113_v45  ;;  %v3669_v45 = vld [vmem:[#allocation8 + $0x244] sm:$0xf] }
  0xf7   :  { %2075 = vmatpush.bf16.msra.mxu0 %v2900_v61  ;;  %v990_v19 = vpop.f32.mrf.mxu0  ;;  %2095 = vmatpush.bf16.msra.mxu2 %v3076_v10  ;;  %v3105_v61 = vld [vmem:[#allocation8 + $0x1a8] sm:$0xf0]  ;;  %v3100_v10 = vor.u32 %v3647_v5, %v3097_v6  ;;  %v3665_v5 = vld [vmem:[#allocation8 + $0x224] sm:$0xf] }
  0xf8   :  { %2108 = vmatpush.bf16.msra.mxu3 %v3140_v15  ;;  %v3108_v63 = vor.u32 %v3649_v52, %v3105_v61  ;;  %v3683_v61 = vld [vmem:[#allocation8 + $0x2b4] sm:$0xf] }
  0xf9   :  { %2088 = vmatpush.bf16.msra.mxu1 %v2964_v62  ;;  %v1003_v23 = vpop.f32.mrf.mxu1 }
  0xfa   :  { %v1004_v29 = vadd.f32 %v1003_v23, %v990_v19  ;;  %v3629_v19 = vld [vmem:[#allocation8 + $0x104] sm:$0xf] }
  0xfb   :  { %2096 = vmatpush.bf16.msra.mxu2 %v3068_v24  ;;  %v3089_v24 = vld [vmem:[#allocation8 + $0x188] sm:$0xf0]  ;;  %v3028_v33 = vor.u32 %v3629_v19, %v3025_v20 }
  0xfc   :  { %2109 = vmatpush.bf16.msra.mxu3 %v3132_v25  ;;  %v3212_v25 = vor.u32 %v3675_v13, %v3209_v14  ;;  %v3233_v13 = vld [vmem:[#allocation8 + $0x2a8] sm:$0xf0] }
  0xfd   :  { %v1016_v30 = vpop.f32.mrf.mxu2 }
  0xff   :  { %v1029_v34 = vpop.f32.mrf.mxu3  ;;  %v992_v38 = vpop.f32.mrf.mxu0  ;;  %2097 = vmatpush.bf16.msra.mxu2 %v3060_v35 }
 0x100   :  { %v1030_v37 = vadd.f32 %v1029_v34, %v1016_v30  ;;  %2110 = vmatpush.bf16.msra.mxu3 %v3124_v36  ;;  %v3201_v30 = vld [vmem:[#allocation8 + $0x268] sm:$0xf0]  ;;  %v3092_v34 = vor.u32 %v3645_v21, %v3089_v24  ;;  %v3268_v36 = vor.u32 %v3689_v31, %v3265_v32  ;;  %v3193_v38 = vld [vmem:[#allocation8 + $0x258] sm:$0xf0] }
 0x101   :  { %v1005_v43 = vpop.f32.mrf.mxu1  ;;  %v3204_v35 = vor.u32 %v3673_v27, %v3201_v30  ;;  %v3225_v24 = vld [vmem:[#allocation8 + $0x298] sm:$0xf0]  ;;  %v3153_v32 = vld [vmem:[#allocation8 + $0x208] sm:$0xf0] }
 0x102   :  { %v1087_v4 = vpack.c.bf16 %v1030_v37, %v1004_v29  ;;  %v3671_v37 = vld [vmem:[#allocation8 + $0x254] sm:$0xf]  ;;  %v1118_v43 = vpack.i.b16 %v4005_v49, %v4005_v49 }
 0x103   :  { %2098 = vmatpush.bf16.msra.mxu2 %v3052_v44  ;;  %v1121_v44 = vpack.i.b16 %v4007_v58, %v4007_v58 }
 0x104   :  { %v1128_v47 = vunpack.c.l.bf16 %v1087_v4  ;;  %v1129_v48 = vunpack.c.h.bf16 %v1087_v4  ;;  %2111 = vmatpush.bf16.msra.mxu3 %v3116_v46  ;;  %v3185_v46 = vld [vmem:[#allocation8 + $0x248] sm:$0xf0]  ;;  %v1120_v50 = vperm.slane %v1118_v43, 0 }
 0x105   :  { %v1018_v57 = vpop.f32.mrf.mxu2  ;;  %v1123_v51 = vperm.slane %v1121_v44, 0  ;;  %v3188_v52 = vor.u32 %v3669_v45, %v3185_v46  ;;  %v3705_v45 = vld [vmem:[#allocation8 + $0x364] sm:$0xf] }
 0x106   :  { %v1144_v53 = vadd.f32 %v1136_v41, %v1128_v47  ;;  %v1145_v54 = vadd.f32 %v1137_v42, %v1129_v48  ;;  %v3196_v41 = vor.u32 %v3671_v37, %v3193_v38  ;;  %v3260_v42 = vor.u32 %v3687_v39, %v3257_v1  ;;  %v3685_v47 = vld [vmem:[#allocation8 + $0x2c4] sm:$0xf]  ;;  %v3249_v48 = vld [vmem:[#allocation8 + $0x2c8] sm:$0xf0]  ;;  %v3723_v39 = vld [vmem:[#allocation8 + $0x3f4] sm:$0xf] }
 0x107   :  { %v1031_v62 = vpop.f32.mrf.mxu3  ;;  %2099 = vmatpush.bf16.msra.mxu2 %v3044_v60  ;;  %v3177_v60 = vld [vmem:[#allocation8 + $0x238] sm:$0xf0] }
 0x108   :  { %v1150_v0 = vpack.c.bf16 %v1145_v54, %v1144_v53  ;;  %2112 = vmatpush.bf16.msra.mxu3 %v3108_v63  ;;  %v3252_v53 = vor.u32 %v3685_v47, %v3249_v48  ;;  %v3667_v54 = vld [vmem:[#allocation8 + $0x234] sm:$0xf]  ;;  %v3241_v62 = vld [vmem:[#allocation8 + $0x2b8] sm:$0xf0]  ;;  %v3329_v48 = vld [vmem:[#allocation8 + $0x368] sm:$0xf0] }
 0x109   :  { %v3180_v2 = vor.u32 %v3667_v54, %v3177_v60  ;;  %v3244_v3 = vor.u32 %v3683_v61, %v3241_v62  ;;  %v3401_v1 = vld [vmem:[#allocation8 + $0x3f8] sm:$0xf0]  ;;  %v3703_v54 = vld [vmem:[#allocation8 + $0x354] sm:$0xf] }
 0x10a   :  { %v1156_v7 = vunpack.c.l.bf16 %v1150_v0  ;;  %v1157_v8 = vunpack.c.h.bf16 %v1150_v0  ;;  %v3404_v44 = vor.u32 %v3723_v39, %v3401_v1  ;;  %v3385_v60 = vld [vmem:[#allocation8 + $0x3d8] sm:$0xf0] }
 0x10b   :  { %2100 = vmatpush.bf16.msra.mxu2 %v3036_v9  ;;  %v3169_v9 = vld [vmem:[#allocation8 + $0x228] sm:$0xf0] }
 0x10c   :  { %v1164_v15 = vmul.f32 0.18164063, %v1156_v7  ;;  %v1165_v16 = vmul.f32 0.18164063, %v1157_v8  ;;  %2113 = vmatpush.bf16.msra.mxu3 %v3100_v10  ;;  %v3681_v10 = vld [vmem:[#allocation8 + $0x2a4] sm:$0xf] }
 0x10d   :  { %v3236_v17 = vor.u32 %v3681_v10, %v3233_v13  ;;  %v3297_v10 = vld [vmem:[#allocation8 + $0x328] sm:$0xf0]  ;;  %v3713_v13 = vld [vmem:[#allocation8 + $0x3a4] sm:$0xf] }
 0x10e   :  { %v1184_v22 = vmax.f32 %v1156_v7, %v1164_v15  ;;  %v1185_v23 = vmax.f32 %v1157_v8, %v1165_v16  ;;  %v1138_v7 = vunpack.c.l.bf16 %v1120_v50  ;;  %v1139_v8 = vunpack.c.l.bf16 %v1123_v51  ;;  %v3721_v50 = vld [vmem:[#allocation8 + $0x3e4] sm:$0xf]  ;;  %v3393_v51 = vld [vmem:[#allocation8 + $0x3e8] sm:$0xf0] }
 0x10f   :  { %2101 = vmatpush.bf16.msra.mxu2 %v3028_v33  ;;  %v3172_v16 = vor.u32 %v3665_v5, %v3169_v9  ;;  %v3677_v33 = vld [vmem:[#allocation8 + $0x284] sm:$0xf]  ;;  %v3699_v5 = vld [vmem:[#allocation8 + $0x334] sm:$0xf] }
 0x110   :  { %v4012_v28 = vpack.c.bf16 %v1184_v22, %v1184_v22  ;;  %v4014_v29 = vpack.c.bf16 %v1185_v23, %v1185_v23  ;;  %2114 = vmatpush.bf16.msra.mxu3 %v3092_v34  ;;  %v3161_v22 = vld [vmem:[#allocation8 + $0x218] sm:$0xf0]  ;;  %v3679_v23 = vld [vmem:[#allocation8 + $0x294] sm:$0xf]  ;;  %v3217_v34 = vld [vmem:[#allocation8 + $0x288] sm:$0xf0] }
 0x111   :  { %v3164_v27 = vor.u32 %v3663_v18, %v3161_v22  ;;  %v3228_v30 = vor.u32 %v3679_v23, %v3225_v24  ;;  %v3697_v9 = vld [vmem:[#allocation8 + $0x324] sm:$0xf]  ;;  %v3289_v18 = vld [vmem:[#allocation8 + $0x318] sm:$0xf0]  ;;  %v3281_v24 = vld [vmem:[#allocation8 + $0x308] sm:$0xf0] }
 0x112   :  { %2024 = vmatmul.bf16.vlgmr.msrb.gmra.mxu0 %v4012_v28  ;;  %2037 = vmatmul.bf16.vlgmr.msrb.gmra.mxu1 %v4014_v29  ;;  %v3693_v23 = vld [vmem:[#allocation8 + $0x304] sm:$0xf] }
 0x113   :  { %2120 = vmatpush.bf16.msrb.mxu0 %v3212_v25  ;;  %2133 = vmatpush.bf16.msrb.mxu1 %v3276_v26 }
 0x117   :  { %v1042_v40 = vpop.f32.mrf.mxu0  ;;  %2121 = vmatpush.bf16.msrb.mxu0 %v3204_v35  ;;  %2134 = vmatpush.bf16.msrb.mxu1 %v3268_v36  ;;  %v3707_v35 = vld [vmem:[#allocation8 + $0x374] sm:$0xf]  ;;  %v3337_v36 = vld [vmem:[#allocation8 + $0x378] sm:$0xf0] }
 0x118   :  { %v3340_v43 = vor.u32 %v3707_v35, %v3337_v36 }
 0x119   :  { %v1055_v4 = vpop.f32.mrf.mxu1 }
 0x11a   :  { %v1056_v57 = vadd.f32 %v1055_v4, %v1042_v40  ;;  %v3220_v4 = vor.u32 %v3677_v33, %v3217_v34 }
 0x11b   :  { %2122 = vmatpush.bf16.msrb.mxu0 %v3196_v41  ;;  %2135 = vmatpush.bf16.msrb.mxu1 %v3260_v42 }
 0x11d   :  { %v1068_v59 = vpop.f32.mrf.mxu2 }
 0x11f   :  { %v1081_v49 = vpop.f32.mrf.mxu3  ;;  %v1044_v63 = vpop.f32.mrf.mxu0  ;;  %2123 = vmatpush.bf16.msrb.mxu0 %v3188_v52  ;;  %2136 = vmatpush.bf16.msrb.mxu1 %v3252_v53  ;;  %v3332_v52 = vor.u32 %v3705_v45, %v3329_v48  ;;  %v3396_v53 = vor.u32 %v3721_v50, %v3393_v51  ;;  %v3731_v48 = vld [vmem:[#allocation10 + $0x30] sm:$0xff]  ;;  %v3730_v51 = vld [vmem:[#allocation10 + $0x28] sm:$0xff] }
 0x120   :  { %v1082_v0 = vadd.f32 %v1081_v49, %v1068_v59  ;;  %v3719_v59 = vld [vmem:[#allocation8 + $0x3d4] sm:$0xf]  ;;  %v3701_v49 = vld [vmem:[#allocation8 + $0x344] sm:$0xf]  ;;  %v3313_v63 = vld [vmem:[#allocation8 + $0x348] sm:$0xf0] }
 0x121   :  { %v1057_v58 = vpop.f32.mrf.mxu1  ;;  %v3388_v62 = vor.u32 %v3719_v59, %v3385_v60  ;;  %v3739_v50 = vld [vmem:[#allocation10 + $0x70] sm:$0xff]  ;;  %v3729_v60 = vld [vmem:[#allocation10 + $0x20] sm:$0xff] }
 0x122   :  { %v1088_v6 = vpack.c.bf16 %v1082_v0, %v1056_v57  ;;  %2076 = vmatmul.bf16.vlgmr.msra.gmra.mxu0 %v3993_v11  ;;  %2089 = vmatmul.bf16.vlgmr.msra.gmra.mxu1 %v3995_v12  ;;  %v3661_v11 = vld [vmem:[#allocation8 + $0x204] sm:$0xf]  ;;  %v3321_v57 = vld [vmem:[#allocation8 + $0x358] sm:$0xf0]  ;;  %v3377_v58 = vld [vmem:[#allocation8 + $0x3c8] sm:$0xf0] }
 0x123   :  { %2124 = vmatpush.bf16.msrb.mxu0 %v3180_v2  ;;  %2137 = vmatpush.bf16.msrb.mxu1 %v3244_v3  ;;  %v3156_v40 = vor.u32 %v3661_v11, %v3153_v32  ;;  %v3324_v61 = vor.u32 %v3703_v54, %v3321_v57  ;;  %v3717_v0 = vld [vmem:[#allocation8 + $0x3c4] sm:$0xf]  ;;  %v3316_v2 = vor.u32 %v3701_v49, %v3313_v63  ;;  %v3728_v63 = vld [vmem:[#allocation10 + $0x18] sm:$0xff] }
 0x124   :  { %v1130_v14 = vunpack.c.l.bf16 %v1088_v6  ;;  %v1131_v15 = vunpack.c.h.bf16 %v1088_v6  ;;  %v3380_v3 = vor.u32 %v3717_v0, %v3377_v58  ;;  %v3305_v6 = vld [vmem:[#allocation8 + $0x338] sm:$0xf0] }
 0x125   :  { %v1070_v21 = vpop.f32.mrf.mxu2  ;;  %v3736_v0 = vld [vmem:[#allocation10 + $0x58] sm:$0xff] }
 0x126   :  { %v1146_v19 = vadd.f32 %v1138_v7, %v1130_v14  ;;  %v1147_v20 = vadd.f32 %v1139_v8, %v1131_v15  ;;  %v3369_v7 = vld [vmem:[#allocation8 + $0x3b8] sm:$0xf0]  ;;  %v3361_v14 = vld [vmem:[#allocation8 + $0x3a8] sm:$0xf0]  ;;  %v3300_v15 = vor.u32 %v3697_v9, %v3297_v10 }
 0x127   :  { %v1083_v25 = vpop.f32.mrf.mxu3  ;;  %2125 = vmatpush.bf16.msrb.mxu0 %v3172_v16  ;;  %2138 = vmatpush.bf16.msrb.mxu1 %v3236_v17  ;;  %v3364_v16 = vor.u32 %v3713_v13, %v3361_v14  ;;  %v3695_v17 = vld [vmem:[#allocation8 + $0x314] sm:$0xf] }
 0x128   :  { %v1151_v26 = vpack.c.bf16 %v1147_v20, %v1146_v19  ;;  %v3711_v19 = vld [vmem:[#allocation8 + $0x394] sm:$0xf]  ;;  %v3353_v20 = vld [vmem:[#allocation8 + $0x398] sm:$0xf0]  ;;  %v3292_v21 = vor.u32 %v3695_v17, %v3289_v18  ;;  %v3709_v25 = vld [vmem:[#allocation8 + $0x384] sm:$0xf] }
 0x129   :  { %v3356_v22 = vor.u32 %v3711_v19, %v3353_v20  ;;  %v2176_v17 = vld [vmem:[#allocation1] sm:$0xff]  ;;  %v2177_v18 = vld [vmem:[#allocation1 + $0x9] sm:$0xff] }
 0x12a   :  { %v1158_v31 = vunpack.c.l.bf16 %v1151_v26  ;;  %v1159_v12 = vunpack.c.h.bf16 %v1151_v26  ;;  %v3345_v26 = vld [vmem:[#allocation8 + $0x388] sm:$0xf0]  ;;  %v2178_v20 = vpack.i.b16 %v2176_v17, %v2176_v17 }
 0x12b   :  { %2126 = vmatpush.bf16.msrb.mxu0 %v3164_v27  ;;  %2139 = vmatpush.bf16.msrb.mxu1 %v3228_v30 }
 0x12c   :  { %v1166_v37 = vmul.f32 0.18164063, %v1158_v31  ;;  %v1167_v38 = vmul.f32 0.18164063, %v1159_v12 }
 0x12e   :  { %v1186_v41 = vmax.f32 %v1158_v31, %v1166_v37  ;;  %v1187_v42 = vmax.f32 %v1159_v12, %v1167_v38 }
 0x12f   :  { %2127 = vmatpush.bf16.msrb.mxu0 %v3156_v40  ;;  %2140 = vmatpush.bf16.msrb.mxu1 %v3220_v4 }
 0x130   :  { %v4024_v46 = vpack.c.bf16 %v1186_v41, %v1186_v41  ;;  %v4026_v47 = vpack.c.bf16 %v1187_v42, %v1187_v42 }
 0x132   :  { %2050 = vmatmul.bf16.vlgmr.msrb.gmra.mxu2 %v4024_v46  ;;  %2063 = vmatmul.bf16.vlgmr.msrb.gmra.mxu3 %v4026_v47 }
 0x133   :  { %2146 = vmatpush.bf16.msrb.mxu2 %v3340_v43  ;;  %2159 = vmatpush.bf16.msrb.mxu3 %v3404_v44 }
 0x134   :  { %2128 = vmatmul.bf16.vlgmr.msrb.gmra.mxu0 %v4012_v28  ;;  %2141 = vmatmul.bf16.vlgmr.msrb.gmra.mxu1 %v4014_v29  ;;  %v3715_v28 = vld [vmem:[#allocation8 + $0x3b4] sm:$0xf]  ;;  %v3308_v29 = vor.u32 %v3699_v5, %v3305_v6  ;;  %v3726_v6 = vld [vmem:[#allocation10 + $0x8] sm:$0xff] }
 0x135   :  { %v3372_v8 = vor.u32 %v3715_v28, %v3369_v7  ;;  %v3735_v5 = vld [vmem:[#allocation10 + $0x50] sm:$0xff]  ;;  %v3734_v28 = vld [vmem:[#allocation10 + $0x48] sm:$0xff]  ;;  %v3725_v7 = vld [vmem:[#allocation10] sm:$0xff] }
 0x137   :  { %2147 = vmatpush.bf16.msrb.mxu2 %v3332_v52  ;;  %2160 = vmatpush.bf16.msrb.mxu3 %v3396_v53  ;;  %v3738_v52 = vld [vmem:[#allocation10 + $0x68] sm:$0xff] }
 0x13b   :  { %2148 = vmatpush.bf16.msrb.mxu2 %v3324_v61  ;;  %2161 = vmatpush.bf16.msrb.mxu3 %v3388_v62  ;;  %v3737_v61 = vld [vmem:[#allocation10 + $0x60] sm:$0xff] }
 0x13f   :  { %2149 = vmatpush.bf16.msrb.mxu2 %v3316_v2  ;;  %2162 = vmatpush.bf16.msrb.mxu3 %v3380_v3  ;;  %v3727_v3 = vld [vmem:[#allocation10 + $0x10] sm:$0xff] }
 0x142   :  { %2102 = vmatmul.bf16.vlgmr.msra.gmra.mxu2 %v3999_v55  ;;  %2115 = vmatmul.bf16.vlgmr.msra.gmra.mxu3 %v4001_v56  ;;  %v3284_v55 = vor.u32 %v3693_v23, %v3281_v24  ;;  %v3348_v56 = vor.u32 %v3709_v25, %v3345_v26 }
 0x143   :  { %2150 = vmatpush.bf16.msrb.mxu2 %v3308_v29  ;;  %2163 = vmatpush.bf16.msrb.mxu3 %v3372_v8  ;;  %v3733_v29 = vld [vmem:[#allocation10 + $0x40] sm:$0xff] }
 0x147   :  { %2151 = vmatpush.bf16.msrb.mxu2 %v3300_v15  ;;  %2164 = vmatpush.bf16.msrb.mxu3 %v3364_v16 }
 0x14b   :  { %2152 = vmatpush.bf16.msrb.mxu2 %v3292_v21  ;;  %2165 = vmatpush.bf16.msrb.mxu3 %v3356_v22  ;;  %v2181_v21 = vpack.i.b16 %v2177_v18, %v2177_v18 }
 0x14f   :  { %2153 = vmatpush.bf16.msrb.mxu2 %v3284_v55  ;;  %2166 = vmatpush.bf16.msrb.mxu3 %v3348_v56  ;;  %v1973_v27 = vpop.f32.mrf.mxu0  ;;  %v1986_v30 = vpop.f32.mrf.mxu1  ;;  %v2180_v55 = vperm.slane %v2178_v20, 0  ;;  %v2183_v56 = vperm.slane %v2181_v21, 0 }
 0x150   :  { %v1987_v11 = vadd.f32 %v1986_v30, %v1973_v27 }
 0x152   :  { %2154 = vmatmul.bf16.vlgmr.msrb.gmra.mxu2 %v4024_v46  ;;  %2167 = vmatmul.bf16.vlgmr.msrb.gmra.mxu3 %v4026_v47  ;;  %v3732_v46 = vld [vmem:[#allocation10 + $0x38] sm:$0xff] }
 0x153   :  { %v3740_v47 = vld [vmem:[#allocation10 + $0x78] sm:$0xff]  ;;  %2334 = vmatpush.bf16.msra.mxu0 %v3732_v46 }
 0x154   :  { %2347 = vmatpush.bf16.msra.mxu1 %v3740_v47 }
 0x157   :  { %v1975_v31 = vpop.f32.mrf.mxu0  ;;  %v1988_v12 = vpop.f32.mrf.mxu1  ;;  %2335 = vmatpush.bf16.msra.mxu0 %v3731_v48 }
 0x158   :  { %2348 = vmatpush.bf16.msra.mxu1 %v3739_v50  ;;  %v2186_v31 = vunpack.c.l.bf16 %v2180_v55  ;;  %v2187_v12 = vunpack.c.l.bf16 %v2183_v56 }
 0x15b   :  { %2336 = vmatpush.bf16.msra.mxu0 %v3730_v51 }
 0x15c   :  { %2349 = vmatpush.bf16.msra.mxu1 %v3738_v52 }
 0x15f   :  { %2337 = vmatpush.bf16.msra.mxu0 %v3729_v60 }
 0x160   :  { %2350 = vmatpush.bf16.msra.mxu1 %v3737_v61 }
 0x163   :  { %2338 = vmatpush.bf16.msra.mxu0 %v3728_v63 }
 0x164   :  { %2351 = vmatpush.bf16.msra.mxu1 %v3736_v0 }
 0x167   :  { %2339 = vmatpush.bf16.msra.mxu0 %v3727_v3 }
 0x168   :  { %2352 = vmatpush.bf16.msra.mxu1 %v3735_v5 }
 0x16b   :  { %2340 = vmatpush.bf16.msra.mxu0 %v3726_v6 }
 0x16c   :  { %2353 = vmatpush.bf16.msra.mxu1 %v3734_v28 }
 0x16f   :  { %2341 = vmatpush.bf16.msra.mxu0 %v3725_v7 }
 0x170   :  { %2354 = vmatpush.bf16.msra.mxu1 %v3733_v29 }
 0x175   :  { %v1999_v32 = vpop.f32.mrf.mxu2  ;;  %v2012_v33 = vpop.f32.mrf.mxu3 }
 0x176   :  { %v2000_v34 = vadd.f32 %v1999_v32, %v1987_v11 }
 0x178   :  { %v2013_v35 = vadd.f32 %v2012_v33, %v2000_v34 }
 0x17d   :  { %v2001_v36 = vpop.f32.mrf.mxu2  ;;  %v2014_v37 = vpop.f32.mrf.mxu3 }
 0x18f   :  { %v2025_v38 = vpop.f32.mrf.mxu0  ;;  %v2038_v39 = vpop.f32.mrf.mxu1 }
 0x190   :  { %v2026_v1 = vadd.f32 %v2025_v38, %v2013_v35 }
 0x192   :  { %v2039_v40 = vadd.f32 %v2038_v39, %v2026_v1 }
 0x197   :  { %v2027_v4 = vpop.f32.mrf.mxu0  ;;  %v2040_v41 = vpop.f32.mrf.mxu1 }
 0x19f   :  { %v2077_v42 = vpop.f32.mrf.mxu0  ;;  %v2090_v43 = vpop.f32.mrf.mxu1 }
 0x1a0   :  { %v2091_v10 = vadd.f32 %v2090_v43, %v2077_v42 }
 0x1a7   :  { %v2079_v44 = vpop.f32.mrf.mxu0  ;;  %v2092_v45 = vpop.f32.mrf.mxu1 }
 0x1a8   :  { %v3753_v45 = vld [vmem:[%s4048_s6] ss:$0 sm:$0xff] }
 0x1b1   :  { %v2129_v53 = vpop.f32.mrf.mxu0  ;;  %v2142_v54 = vpop.f32.mrf.mxu1 }
 0x1b5   :  { %v2051_v57 = vpop.f32.mrf.mxu2  ;;  %v2064_v59 = vpop.f32.mrf.mxu3 }
 0x1b6   :  { %v2052_v22 = vadd.f32 %v2051_v57, %v2039_v40 }
 0x1b8   :  { %v2065_v27 = vadd.f32 %v2064_v59, %v2052_v22 }
 0x1b9   :  { %v2131_v62 = vpop.f32.mrf.mxu0  ;;  %v2144_v49 = vpop.f32.mrf.mxu1 }
 0x1bd   :  { %v2053_v58 = vpop.f32.mrf.mxu2  ;;  %v2066_v2 = vpop.f32.mrf.mxu3 }
 0x1c5   :  { %v2103_v8 = vpop.f32.mrf.mxu2  ;;  %v2116_v9 = vpop.f32.mrf.mxu3 }
 0x1c6   :  { %v2104_v13 = vadd.f32 %v2103_v8, %v2091_v10 }
 0x1c8   :  { %v2117_v14 = vadd.f32 %v2116_v9, %v2104_v13 }
 0x1ca   :  { %v2130_v19 = vadd.f32 %v2129_v53, %v2117_v14 }
 0x1cc   :  { %v2143_v23 = vadd.f32 %v2142_v54, %v2130_v19 }
 0x1cd   :  { %v2105_v15 = vpop.f32.mrf.mxu2  ;;  %v2118_v16 = vpop.f32.mrf.mxu3 }
 0x1d5   :  { %v2155_v24 = vpop.f32.mrf.mxu2  ;;  %v2168_v25 = vpop.f32.mrf.mxu3 }
 0x1d6   :  { %v2156_v26 = vadd.f32 %v2155_v24, %v2143_v23 }
 0x1d8   :  { %v2169_v30 = vadd.f32 %v2168_v25, %v2156_v26 }
 0x1da   :  { %v2172_v11 = vpack.c.bf16 %v2169_v30, %v2065_v27 }
 0x1dc   :  { %v2184_v32 = vunpack.c.l.bf16 %v2172_v11  ;;  %v2185_v33 = vunpack.c.h.bf16 %v2172_v11 }
 0x1dd   :  { %v2157_v34 = vpop.f32.mrf.mxu2  ;;  %v2170_v35 = vpop.f32.mrf.mxu3 }
 0x1de   :  { %v2188_v36 = vadd.f32 %v2186_v31, %v2184_v32  ;;  %v2189_v37 = vadd.f32 %v2187_v12, %v2185_v33 }
 0x1e0   :  { %v2190_v38 = vpack.c.bf16 %v2189_v37, %v2188_v36 }
 0x1e2   :  { %v2191_v39 = vunpack.c.l.bf16 %v2190_v38  ;;  %v2192_v1 = vunpack.c.h.bf16 %v2190_v38 }
 0x1e4   :  { %v2193_v40 = vmul.f32 0.18164063, %v2191_v39  ;;  %v2194_v4 = vmul.f32 0.18164063, %v2192_v1 }
 0x1e6   :  { %v2198_v41 = vmax.f32 %v2191_v39, %v2193_v40  ;;  %v2199_v42 = vmax.f32 %v2192_v1, %v2194_v4 }
 0x1e8   :  { %v2200_v43 = vpack.c.bf16 %v2198_v41, %v2198_v41  ;;  %v2201_v44 = vpack.c.bf16 %v2199_v42, %v2199_v42 }
 0x1ea   :  { %2342 = vmatmul.bf16.vlgmr.msra.gmra.mxu0 %v2200_v43  ;;  %2355 = vmatmul.bf16.vlgmr.msra.gmra.mxu1 %v2201_v44 }
 0x267   :  { %v2343_v46 = vpop.f32.mrf.mxu0  ;;  %v2356_v47 = vpop.f32.mrf.mxu1 }
 0x268   :  { %v2344_v48 = vadd.f32 %v3753_v45, %v2343_v46 }
 0x26a   :  { %v2357_v50 = vadd.f32 %v2356_v47, %v2344_v48 }
 0x26c   :  { %v2360_v51 = vpack.c.bf16 %v2357_v50, %v2357_v50 }
 0x26e   :  { %2361 = vst [vmem:[#allocation11] sm:$0xf] %v2360_v51 }
 0x26f   :  { %v2345_v52 = vpop.f32.mrf.mxu0  ;;  %v2358_v53 = vpop.f32.mrf.mxu1  ;;  %2372 = dma.vmem_to_hbm [thread:$0]  %s2368_s8, 64, %s2370_s11, [#allocation4]  }
 0x270   :  { %3904 = dma.done.wait [#allocation4], 64  }
 0x271   :  { %3905 = vsyncadd [#allocation4], 4294967232 }
 0x272   :  { %2377 = vsyncpa [#allocation3], 1 }
 0x273   :  { %2378 = vsyncpa [#allocation6], 1 }
 0x274   :  { %2379 = vsyncpa [#allocation9], 1 }
 0x275   :  { %2380 = vsyncpa [#allocation4], 1 }

</bundles_post_ra>
